<compile_context>
chip_gen: v6e
topology: v6e:2x2x1
jax: 0.10.0
libtpu: 0.0.40
codegen_flags: <defaults>
</compile_context>

<pallas_src>
import functools

import jax
import jax.numpy as jnp
from jax.experimental import pallas as pl
from jax.experimental.pallas import tpu as pltpu


def _leaky_relu(x, slope=0.01):
    return jnp.where(x >= 0, x, slope * x)


def _round_up(n, m):
    return ((n + m - 1) // m) * m


# ----------------------------------------------------------------------------
# Kernel A: encoder (streamed over P) + decoder + selection / primitive heads.
# Single program, everything resident in VMEM (weights are tiny).
# ----------------------------------------------------------------------------
def encode_decode_kernel(vox_ref, ew_ref, eb_ref,
                         w1_ref, b1_ref, w2_ref, b2_ref, w3_ref, b3_ref,
                         wu_ref, bu_ref, wp_ref, bp_ref, mult_ref, add_ref,
                         u_ref, prim_ref, *, is_training, p_chunk):
    # ---- Encoder surrogate: pointwise MLP + ReLU + max over points --------
    # Streamed in `p_chunk` lane chunks: the (B, F, P) intermediate is never
    # materialized, only a running (B, F) max.  Pure VPU broadcast FMAs with
    # the points on the lane axis (no degenerate contraction-3 matmul).
    ew = ew_ref[...]                                   # (F, 3)  torch (out,in)
    eb = eb_ref[...]                                   # (F, 1)
    n_chunks = vox_ref.shape[2] // p_chunk

    def chunk_feat(c):
        pts = vox_ref[:, :, pl.ds(c * p_chunk, p_chunk)]   # (Bpad, 3, chunk)
        h = (ew[None, :, 0:1] * pts[:, 0:1, :] +
             ew[None, :, 1:2] * pts[:, 1:2, :] +
             ew[None, :, 2:3] * pts[:, 2:3, :] + eb[None])  # (Bpad, F, chunk)
        return jnp.max(jnp.maximum(h, 0.0), axis=2)          # (Bpad, F)

    feature = chunk_feat(0)
    for c in range(1, n_chunks):                       # static, small trip
        feature = jnp.maximum(feature, chunk_feat(c))

    # ---- Decoder: 3 x (Linear + LeakyReLU), bf16 MXU inputs, f32 acc ------
    def linear(x, w_ref, b_ref):
        return jnp.dot(x.astype(jnp.bfloat16), w_ref[...],
                       preferred_element_type=jnp.float32) + b_ref[...]

    l1 = _leaky_relu(linear(feature, w1_ref, b1_ref))
    l2 = _leaky_relu(linear(l1, w2_ref, b2_ref))
    l3 = _leaky_relu(linear(l2, w3_ref, b3_ref))       # (Bpad, 8F)

    # ---- SelectionHead (lane-padded to 128 output columns) ----------------
    u = linear(l3, wu_ref, bu_ref)                     # (Bpad, Kpad)
    if is_training:
        u_sel = jax.nn.sigmoid(u)
    else:
        u_sel = (u > 0).astype(jnp.float32)
    u_ref[...] = u_sel

    # ---- SweptVolumeHead ---------------------------------------------------
    s = jax.nn.sigmoid(linear(l3, wp_ref, bp_ref))     # (Bpad, Ppad)
    prim_ref[...] = s * mult_ref[...] + add_ref[...]


# ----------------------------------------------------------------------------
# Kernel B: neural-sweeper occupancy combination, tiled over N (parallel grid).
# ----------------------------------------------------------------------------
def sweeper_kernel(coords_ref, u_ref, prim_ref, occ_ref, *maybe_preu,
                   num_primitives, num_prim_params, sharpness, is_training,
                   batch_pad, with_preu):
    preu_ref = maybe_preu[0] if with_preu else None

    px = coords_ref[0]                                 # (Bpad, Ntile)
    py = coords_ref[1]
    pz = coords_ref[2]
    # Hoist |p|^2 out of the K loop (d2 = |p|^2 - 2 c.p + |c|^2).
    pnorm2 = px * px + py * py + pz * pz

    u_sel = u_ref[...]                                 # (Bpad, Kpad)
    prim = prim_ref[...]                               # (Bpad, Ppad)

    m = None
    num = None
    den = None
    for k in range(num_primitives):                    # static unroll, K small
        base = k * num_prim_params
        cx = prim[:, base + 0:base + 1]                # (Bpad, 1)
        cy = prim[:, base + 1:base + 2]
        cz = prim[:, base + 2:base + 3]
        cnorm2 = cx * cx + cy * cy + cz * cz
        d2 = pnorm2 + ((-2.0 * cx) * px + (-2.0 * cy) * py
                       + (-2.0 * cz) * pz + cnorm2)    # (Bpad, Ntile)
        # TODO(synk): surrogate for the external neural_sweeper occupancy net.
        occ_sel_k = jax.nn.sigmoid(sharpness * (0.25 - d2))
        pre_k = u_sel[:, k:k + 1] * occ_sel_k          # (Bpad, Ntile)

        if with_preu:
            # Flattened (K*Bpad, Ntile) layout: each store covers an exact
            # multiple of 8 sublanes x full lanes (unmasked vreg writes).
            preu_ref[pl.ds(k * batch_pad, batch_pad), :] = pre_k

        # Online combination: O(1) vreg pressure in K.
        if m is None:
            m = pre_k
            if is_training:
                num = pre_k                            # exp(40*(pre-m)) == 1
                den = jnp.ones_like(pre_k)
        else:
            if is_training:
                m_new = jnp.maximum(m, pre_k)
                scale = jnp.exp(40.0 * (m - m_new))
                e = jnp.exp(40.0 * (pre_k - m_new))
                num = num * scale + e * pre_k
                den = den * scale + e
                m = m_new
            else:
                m = jnp.maximum(m, pre_k)

    if is_training:
        # occ = sum_k softmax_k(40*pre)_k * pre_k  (online-softmax form).
        occ_ref[...] = num * pl.reciprocal(den, approx=True)
    else:
        occ_ref[...] = m


# ----------------------------------------------------------------------------
# Parameter init (deterministic, xavier-uniform weights / zero biases).
# Linear weights stored (in, out) so kernels compute x @ W + b; head weights
# zero-padded on the output dim to a lane multiple (128).
# ----------------------------------------------------------------------------
def init_params(key, feature_dim, num_primitives, bspline_control_points):
    F = feature_dim
    K = num_primitives
    cp = bspline_control_points
    PP = cp * 3 + 3 + 2
    Kpad = _round_up(K, 128)
    Ppad = _round_up(K * PP, 128)

    def xav(k, fi, fo, shape=None):
        lim = (6.0 / (fi + fo)) ** 0.5
        return jax.random.uniform(k, shape or (fi, fo), jnp.float32, -lim, lim)

    keys = jax.random.split(key, 6)
    params = dict(
        enc_w=xav(keys[0], 3, F, shape=(F, 3)),
        enc_b=jnp.zeros((F, 1), jnp.float32),
        w1=xav(keys[1], F, 2 * F), b1=jnp.zeros((1, 2 * F), jnp.float32),
        w2=xav(keys[2], 2 * F, 4 * F), b2=jnp.zeros((1, 4 * F), jnp.float32),
        w3=xav(keys[3], 4 * F, 8 * F), b3=jnp.zeros((1, 8 * F), jnp.float32),
    )
    wu = xav(keys[4], 8 * F, K)
    wp = xav(keys[5], 8 * F, K * PP)
    params['wu'] = jnp.zeros((8 * F, Kpad), jnp.float32).at[:, :K].set(wu)
    params['bu'] = jnp.zeros((1, Kpad), jnp.float32)
    params['wp'] = jnp.zeros((8 * F, Ppad), jnp.float32).at[:, :K * PP].set(wp)
    params['bp'] = jnp.zeros((1, Ppad), jnp.float32)

    # shapes_adder / shapes_multiplier exactly as SweptVolumeHead.__init__
    # (primitive-major flattening matches the torch .view(-1, K, PP) order).
    add = jnp.zeros((PP,), jnp.float32)
    add = add.at[:cp * 3].set(-0.5)
    add = add.at[cp * 3 + 3:].set(-0.5)
    add = add.at[cp * 3:cp * 3 + 2].set(0.01)
    add = add.at[cp * 3 + 2].set(0.5)
    mult = jnp.ones((PP,), jnp.float32)
    mult = mult.at[cp * 3:cp * 3 + 2].set(0.49)
    mult = mult.at[cp * 3 + 2].set(4.5)
    params['add'] = jnp.zeros((1, Ppad), jnp.float32).at[0, :K * PP].set(
        jnp.tile(add, (K,)))
    params['mult'] = jnp.zeros((1, Ppad), jnp.float32).at[0, :K * PP].set(
        jnp.tile(mult, (K,)))
    return params


# ----------------------------------------------------------------------------
# SweepNetPCD forward (two pallas_calls)
# ----------------------------------------------------------------------------
def sweepnet_pcd_forward(params, voxel, sample_coordinates, *, num_primitives,
                         bspline_control_points, sharpness, is_training=True,
                         return_occ_pre_union=True, n_tile=512):
    B = voxel.shape[0]
    P = voxel.shape[2]
    K = num_primitives
    PP = bspline_control_points * 3 + 5
    N = sample_coordinates.shape[1]

    Bpad = _round_up(B, 8)
    Kpad = params['wu'].shape[1]
    Ppad = params['wp'].shape[1]
    p_chunk = min(_round_up(P, 128), 128)      # stream encoder in 128-lane chunks
    Ppts = _round_up(P, p_chunk)
    n_tile = min(n_tile, _round_up(N, 128))
    Npad = _round_up(N, n_tile)

    # --- layout plumbing ----------------------------------------------------
    vox = voxel.astype(jnp.float32)
    vox = jnp.pad(vox, ((0, Bpad - B), (0, 0), (0, 0)))             # batch pad
    vox = jnp.pad(vox, ((0, 0), (0, 0), (0, Ppts - P)), mode='edge')  # max-safe

    # sample coordinates -> (3, Bpad, Npad): channels major, points on lanes.
    coords = jnp.transpose(sample_coordinates.astype(jnp.float32), (2, 0, 1))
    coords = jnp.pad(coords, ((0, 0), (0, Bpad - B), (0, Npad - N)))

    # bf16 weights for the MXU (f32 accumulation); biases stay f32.
    w1b = params['w1'].astype(jnp.bfloat16)
    w2b = params['w2'].astype(jnp.bfloat16)
    w3b = params['w3'].astype(jnp.bfloat16)
    wub = params['wu'].astype(jnp.bfloat16)
    wpb = params['wp'].astype(jnp.bfloat16)

    vmem = pl.BlockSpec(memory_space=pltpu.MemorySpace.VMEM)

    # --- Kernel A: encoder + decoder + heads --------------------------------
    enc_kernel = functools.partial(encode_decode_kernel,
                                   is_training=is_training, p_chunk=p_chunk)
    u_sel, prim = pl.pallas_call(
        enc_kernel,
        out_shape=(jax.ShapeDtypeStruct((Bpad, Kpad), jnp.float32),
                   jax.ShapeDtypeStruct((Bpad, Ppad), jnp.float32)),
        in_specs=[vmem] * 15,
        out_specs=(vmem, vmem),
        compiler_params=pltpu.CompilerParams(
            vmem_limit_bytes=32 * 1024 * 1024),
    )(vox, params['enc_w'], params['enc_b'],
      w1b, params['b1'], w2b, params['b2'], w3b, params['b3'],
      wub, params['bu'], wpb, params['bp'], params['mult'], params['add'])

    # --- Kernel B: sweeper, tiled over N, parallel grid (v7x megacore) ------
    KB = K * Bpad
    grid = (Npad // n_tile,)
    out_shapes = [jax.ShapeDtypeStruct((Bpad, Npad), jnp.float32)]
    out_specs = [pl.BlockSpec((Bpad, n_tile), lambda n: (0, n))]
    if return_occ_pre_union:
        out_shapes.append(jax.ShapeDtypeStruct((KB, Npad), jnp.float32))
        out_specs.append(pl.BlockSpec((KB, n_tile), lambda n: (0, n)))

    sweep_kernel = functools.partial(
        sweeper_kernel, num_primitives=K, num_prim_params=PP,
        sharpness=float(sharpness), is_training=is_training,
        batch_pad=Bpad, with_preu=return_occ_pre_union)

    n_out = 1 + (K if return_occ_pre_union else 0)
    cost = pl.CostEstimate(
        flops=int(Bpad * Npad * (K * 10 + 3)),
        transcendentals=int(Bpad * Npad * K * 2),
        bytes_accessed=int(4 * Bpad * Npad * (3 + n_out)),
    )

    outs = pl.pallas_call(
        sweep_kernel,
        out_shape=tuple(out_shapes),
        grid=grid,
        in_specs=[pl.BlockSpec((3, Bpad, n_tile), lambda n: (0, 0, n)),
                  pl.BlockSpec((Bpad, Kpad), lambda n: (0, 0)),
                  pl.BlockSpec((Bpad, Ppad), lambda n: (0, 0))],
        out_specs=tuple(out_specs),
        compiler_params=pltpu.CompilerParams(
            dimension_semantics=("parallel",),
            vmem_limit_bytes=32 * 1024 * 1024),
        cost_estimate=cost,
    )(coords, u_sel, prim)

    occ_pad = outs[0]
    occupancies = occ_pad[:B, :N]
    union_w = u_sel[:B, :K]
    primitive_parameters = prim[:B, :K * PP].reshape(B, K, PP)
    if return_occ_pre_union:
        preu_pad = outs[1].reshape(K, Bpad, Npad)[:, :B, :N]
        # Relabel to the torch (B, N, K) output layout.  At production N this
        # transpose is a second HBM pass; gate it off with
        # return_occ_pre_union=False when the caller does not need it.
        occ_pre_union = jnp.transpose(preu_pad, (1, 2, 0))
    else:
        occ_pre_union = None
    return occupancies, occ_pre_union, primitive_parameters, union_w


# ----------------------------------------------------------------------------
# Pure-jnp reference (mirrors the kernel math, incl. bf16 MXU inputs)
# ----------------------------------------------------------------------------
def _reference_forward(params, voxel, sample_coordinates, *, num_primitives,
                       bspline_control_points, sharpness, is_training):
    K = num_primitives
    PP = bspline_control_points * 3 + 5
    B = voxel.shape[0]

    pts = voxel.astype(jnp.float32)                             # (B, 3, P)
    ew, eb = params['enc_w'], params['enc_b']
    h = (ew[None, :, 0:1] * pts[:, 0:1, :] +
         ew[None, :, 1:2] * pts[:, 1:2, :] +
         ew[None, :, 2:3] * pts[:, 2:3, :] + eb[None])
    feature = jnp.max(jnp.maximum(h, 0.0), axis=2)              # (B, F)

    def lin(x, w, b):
        return jnp.dot(x.astype(jnp.bfloat16), w.astype(jnp.bfloat16),
                       preferred_element_type=jnp.float32) + b

    l1 = _leaky_relu(lin(feature, params['w1'], params['b1']))
    l2 = _leaky_relu(lin(l1, params['w2'], params['b2']))
    l3 = _leaky_relu(lin(l2, params['w3'], params['b3']))

    u = lin(l3, params['wu'], params['bu'])[:, :K]
    union = jax.nn.sigmoid(u) if is_training else (u > 0).astype(jnp.float32)

    s = jax.nn.sigmoid(lin(l3, params['wp'], params['bp']))
    prim = (s * params['mult'] + params['add'])[:, :K * PP].reshape(B, K, PP)

    coords = sample_coordinates.astype(jnp.float32)             # (B, N, 3)
    centers = prim[:, :, 0:3]                                   # (B, K, 3)
    d2 = jnp.sum((coords[:, :, None, :] - centers[:, None, :, :]) ** 2,
                 axis=-1)                                       # (B, N, K)
    occ_sel = jax.nn.sigmoid(sharpness * (0.25 - d2))
    pre_union = union[:, None, :] * occ_sel                     # (B, N, K)
    if is_training:
        w = jax.nn.softmax(pre_union * 40.0, axis=-1)
        occ = jnp.sum(w * pre_union, axis=-1)
    else:
        occ = jnp.max(pre_union, axis=-1)
    return occ, pre_union, prim, union


if __name__ == "__main__":
    # config (small, consistent with the module)
    B, P, N = 2, 64, 16
    feature_dim = 32
    num_primitives = 4
    bspline_control_points = 8
    sharpness = 25.0
    PP = bspline_control_points * 3 + 5

    key = jax.random.PRNGKey(0)
    k_params, k_vox, k_coord = jax.random.split(key, 3)

    params = init_params(k_params, feature_dim, num_primitives,
                         bspline_control_points)
    voxel = jax.random.uniform(k_vox, (B, 3, P), jnp.float32, -0.5, 0.5)
    sample_coordinates = jax.random.uniform(k_coord, (B, N, 3), jnp.float32,
                                            -0.5, 0.5)

    common = dict(num_primitives=num_primitives,
                  bspline_control_points=bspline_control_points,
                  sharpness=sharpness)
    fwd_train = jax.jit(functools.partial(sweepnet_pcd_forward,
                                          is_training=True, **common))
    fwd_eval = jax.jit(functools.partial(sweepnet_pcd_forward,
                                         is_training=False, **common))
    fwd_light = jax.jit(functools.partial(sweepnet_pcd_forward,
                                          is_training=False,
                                          return_occ_pre_union=False,
                                          **common))

    outs_train = fwd_train(params, voxel, sample_coordinates)
    outs_eval = fwd_eval(params, voxel, sample_coordinates)
    outs_light = fwd_light(params, voxel, sample_coordinates)
    jax.block_until_ready(outs_train)
    jax.block_until_ready(outs_eval)
    jax.block_until_ready((outs_light[0], outs_light[2], outs_light[3]))

    occ, occ_pre_union, prim_params, union_w = outs_train
    assert occ.shape == (B, N)
    assert occ_pre_union.shape == (B, N, num_primitives)
    assert prim_params.shape == (B, num_primitives, PP)
    assert union_w.shape == (B, num_primitives)
    for o in outs_eval:
        assert bool(jnp.all(jnp.isfinite(o)))
    assert outs_light[1] is None
    assert bool(jnp.all(jnp.isfinite(outs_light[0])))
    assert bool(jnp.allclose(outs_light[0], outs_eval[0], atol=1e-6))

    # Training branch is smooth everywhere -> compare against a pure-jnp
    # reference that mirrors the kernel math (bf16 MXU inputs); the loose
    # tolerance absorbs sigmoid / approx-reciprocal / d2-expansion deltas.
    ref_train = _reference_forward(params, voxel, sample_coordinates,
                                   is_training=True, **common)
    for got, want in zip(outs_train, ref_train):
        assert got.shape == want.shape
        err = float(jnp.max(jnp.abs(got - want)))
        assert err < 3e-2, f"mismatch vs reference: max abs err = {err}"

    print("KERNEL_OK")
</pallas_src>

<mosaic_0001>
module attributes {stable_mosaic.version = 11 : i64} {
  func.func @sweeper_kernel(%arg0: i32, %arg1: memref<3x8x128xf32, #tpu.memory_space<vmem>>, %arg2: memref<8x128xf32, #tpu.memory_space<vmem>>, %arg3: memref<8x128xf32, #tpu.memory_space<vmem>>, %arg4: memref<8x128xf32, #tpu.memory_space<vmem>>, %arg5: memref<32x128xf32, #tpu.memory_space<vmem>>) attributes {dimension_semantics = [#tpu.dimension_semantics<parallel>], iteration_bounds = array<i64: 1>, scalar_prefetch = 0 : i64, scratch_operands = 0 : i64, tpu.core_type = #tpu.core_type<tc>, window_params = [{transform_indices = @transform_0, window_bounds = array<i64: 3, 8, 128>}, {pipeline_mode = #tpu.pipeline_mode<synchronous>, transform_indices = @transform_1, window_bounds = array<i64: 8, 128>}, {pipeline_mode = #tpu.pipeline_mode<synchronous>, transform_indices = @transform_2, window_bounds = array<i64: 8, 128>}, {transform_indices = @transform_3, window_bounds = array<i64: 8, 128>}, {transform_indices = @transform_4, window_bounds = array<i64: 32, 128>}]} {
    %c0 = arith.constant 0 : index
    %c0_0 = arith.constant 0 : index
    %c0_1 = arith.constant 0 : index
    %0 = vector.load %arg1[%c0, %c0_0, %c0_1] : memref<3x8x128xf32, #tpu.memory_space<vmem>>, vector<1x8x128xf32>
    %1 = vector.shape_cast %0 : vector<1x8x128xf32> to vector<8x128xf32>
    %c1 = arith.constant 1 : index
    %c0_2 = arith.constant 0 : index
    %c0_3 = arith.constant 0 : index
    %2 = vector.load %arg1[%c1, %c0_2, %c0_3] : memref<3x8x128xf32, #tpu.memory_space<vmem>>, vector<1x8x128xf32>
    %3 = vector.shape_cast %2 : vector<1x8x128xf32> to vector<8x128xf32>
    %c2 = arith.constant 2 : index
    %c0_4 = arith.constant 0 : index
    %c0_5 = arith.constant 0 : index
    %4 = vector.load %arg1[%c2, %c0_4, %c0_5] : memref<3x8x128xf32, #tpu.memory_space<vmem>>, vector<1x8x128xf32>
    %5 = vector.shape_cast %4 : vector<1x8x128xf32> to vector<8x128xf32>
    %6 = arith.mulf %1, %1 : vector<8x128xf32>
    %7 = arith.mulf %3, %3 : vector<8x128xf32>
    %8 = arith.addf %6, %7 : vector<8x128xf32>
    %9 = arith.mulf %5, %5 : vector<8x128xf32>
    %10 = arith.addf %8, %9 : vector<8x128xf32>
    %c0_6 = arith.constant 0 : index
    %c0_7 = arith.constant 0 : index
    %11 = vector.load %arg2[%c0_6, %c0_7] : memref<8x128xf32, #tpu.memory_space<vmem>>, vector<8x128xf32>
    %c0_8 = arith.constant 0 : index
    %c0_9 = arith.constant 0 : index
    %12 = vector.load %arg3[%c0_8, %c0_9] : memref<8x128xf32, #tpu.memory_space<vmem>>, vector<8x128xf32>
    %13 = vector.extract_strided_slice %12 {offsets = [0, 0], sizes = [8, 1], strides = [1, 1]} : vector<8x128xf32> to vector<8x1xf32>
    %14 = vector.extract_strided_slice %12 {offsets = [0, 1], sizes = [8, 1], strides = [1, 1]} : vector<8x128xf32> to vector<8x1xf32>
    %15 = vector.extract_strided_slice %12 {offsets = [0, 2], sizes = [8, 1], strides = [1, 1]} : vector<8x128xf32> to vector<8x1xf32>
    %16 = arith.mulf %13, %13 : vector<8x1xf32>
    %17 = arith.mulf %14, %14 : vector<8x1xf32>
    %18 = arith.addf %16, %17 : vector<8x1xf32>
    %19 = arith.mulf %15, %15 : vector<8x1xf32>
    %20 = arith.addf %18, %19 : vector<8x1xf32>
    %cst = arith.constant -2.000000e+00 : f32
    %21 = vector.broadcast %cst : f32 to vector<8x1xf32>
    %22 = arith.mulf %21, %13 : vector<8x1xf32>
    %23 = vector.broadcast %22 : vector<8x1xf32> to vector<8x128xf32>
    %24 = arith.mulf %23, %1 : vector<8x128xf32>
    %cst_10 = arith.constant -2.000000e+00 : f32
    %25 = vector.broadcast %cst_10 : f32 to vector<8x1xf32>
    %26 = arith.mulf %25, %14 : vector<8x1xf32>
    %27 = vector.broadcast %26 : vector<8x1xf32> to vector<8x128xf32>
    %28 = arith.mulf %27, %3 : vector<8x128xf32>
    %29 = arith.addf %24, %28 : vector<8x128xf32>
    %cst_11 = arith.constant -2.000000e+00 : f32
    %30 = vector.broadcast %cst_11 : f32 to vector<8x1xf32>
    %31 = arith.mulf %30, %15 : vector<8x1xf32>
    %32 = vector.broadcast %31 : vector<8x1xf32> to vector<8x128xf32>
    %33 = arith.mulf %32, %5 : vector<8x128xf32>
    %34 = arith.addf %29, %33 : vector<8x128xf32>
    %35 = vector.broadcast %20 : vector<8x1xf32> to vector<8x128xf32>
    %36 = arith.addf %34, %35 : vector<8x128xf32>
    %37 = arith.addf %10, %36 : vector<8x128xf32>
    %cst_12 = arith.constant 2.500000e-01 : f32
    %38 = vector.broadcast %cst_12 : f32 to vector<8x128xf32>
    %39 = arith.subf %38, %37 : vector<8x128xf32>
    %cst_13 = arith.constant 2.500000e+01 : f32
    %40 = vector.broadcast %cst_13 : f32 to vector<8x128xf32>
    %41 = arith.mulf %40, %39 : vector<8x128xf32>
    %42 = arith.negf %41 : vector<8x128xf32>
    %43 = math.exp %42 : vector<8x128xf32>
    %cst_14 = arith.constant 1.000000e+00 : f32
    %44 = vector.broadcast %cst_14 : f32 to vector<8x128xf32>
    %45 = arith.addf %44, %43 : vector<8x128xf32>
    %46 = arith.divf %44, %45 : vector<8x128xf32>
    %47 = vector.extract_strided_slice %11 {offsets = [0, 0], sizes = [8, 1], strides = [1, 1]} : vector<8x128xf32> to vector<8x1xf32>
    %48 = vector.broadcast %47 : vector<8x1xf32> to vector<8x128xf32>
    %49 = arith.mulf %48, %46 : vector<8x128xf32>
    %c0_15 = arith.constant 0 : index
    %c0_16 = arith.constant 0 : index
    %50 = vector.load %arg5[%c0_15, %c0_16] : memref<32x128xf32, #tpu.memory_space<vmem>>, vector<8x128xf32>
    tpu.vector_store %arg5[%c0_15, %c0_16], %49 {strides = array<i32>} : memref<32x128xf32, #tpu.memory_space<vmem>>, vector<8x128xf32>,
    %cst_17 = arith.constant 1.000000e+00 : f32
    %51 = vector.broadcast %cst_17 : f32 to vector<8x128xf32>
    %52 = vector.extract_strided_slice %12 {offsets = [0, 29], sizes = [8, 1], strides = [1, 1]} : vector<8x128xf32> to vector<8x1xf32>
    %53 = vector.extract_strided_slice %12 {offsets = [0, 30], sizes = [8, 1], strides = [1, 1]} : vector<8x128xf32> to vector<8x1xf32>
    %54 = vector.extract_strided_slice %12 {offsets = [0, 31], sizes = [8, 1], strides = [1, 1]} : vector<8x128xf32> to vector<8x1xf32>
    %55 = arith.mulf %52, %52 : vector<8x1xf32>
    %56 = arith.mulf %53, %53 : vector<8x1xf32>
    %57 = arith.addf %55, %56 : vector<8x1xf32>
    %58 = arith.mulf %54, %54 : vector<8x1xf32>
    %59 = arith.addf %57, %58 : vector<8x1xf32>
    %cst_18 = arith.constant -2.000000e+00 : f32
    %60 = vector.broadcast %cst_18 : f32 to vector<8x1xf32>
    %61 = arith.mulf %60, %52 : vector<8x1xf32>
    %62 = vector.broadcast %61 : vector<8x1xf32> to vector<8x128xf32>
    %63 = arith.mulf %62, %1 : vector<8x128xf32>
    %cst_19 = arith.constant -2.000000e+00 : f32
    %64 = vector.broadcast %cst_19 : f32 to vector<8x1xf32>
    %65 = arith.mulf %64, %53 : vector<8x1xf32>
    %66 = vector.broadcast %65 : vector<8x1xf32> to vector<8x128xf32>
    %67 = arith.mulf %66, %3 : vector<8x128xf32>
    %68 = arith.addf %63, %67 : vector<8x128xf32>
    %cst_20 = arith.constant -2.000000e+00 : f32
    %69 = vector.broadcast %cst_20 : f32 to vector<8x1xf32>
    %70 = arith.mulf %69, %54 : vector<8x1xf32>
    %71 = vector.broadcast %70 : vector<8x1xf32> to vector<8x128xf32>
    %72 = arith.mulf %71, %5 : vector<8x128xf32>
    %73 = arith.addf %68, %72 : vector<8x128xf32>
    %74 = vector.broadcast %59 : vector<8x1xf32> to vector<8x128xf32>
    %75 = arith.addf %73, %74 : vector<8x128xf32>
    %76 = arith.addf %10, %75 : vector<8x128xf32>
    %cst_21 = arith.constant 2.500000e-01 : f32
    %77 = vector.broadcast %cst_21 : f32 to vector<8x128xf32>
    %78 = arith.subf %77, %76 : vector<8x128xf32>
    %cst_22 = arith.constant 2.500000e+01 : f32
    %79 = vector.broadcast %cst_22 : f32 to vector<8x128xf32>
    %80 = arith.mulf %79, %78 : vector<8x128xf32>
    %81 = arith.negf %80 : vector<8x128xf32>
    %82 = math.exp %81 : vector<8x128xf32>
    %cst_23 = arith.constant 1.000000e+00 : f32
    %83 = vector.broadcast %cst_23 : f32 to vector<8x128xf32>
    %84 = arith.addf %83, %82 : vector<8x128xf32>
    %85 = arith.divf %83, %84 : vector<8x128xf32>
    %86 = vector.extract_strided_slice %11 {offsets = [0, 1], sizes = [8, 1], strides = [1, 1]} : vector<8x128xf32> to vector<8x1xf32>
    %87 = vector.broadcast %86 : vector<8x1xf32> to vector<8x128xf32>
    %88 = arith.mulf %87, %85 : vector<8x128xf32>
    %c8 = arith.constant 8 : index
    %c0_24 = arith.constant 0 : index
    %89 = vector.load %arg5[%c8, %c0_24] : memref<32x128xf32, #tpu.memory_space<vmem>>, vector<8x128xf32>
    tpu.vector_store %arg5[%c8, %c0_24], %88 {strides = array<i32>} : memref<32x128xf32, #tpu.memory_space<vmem>>, vector<8x128xf32>,
    %90 = arith.maximumf %49, %88 : vector<8x128xf32>
    %91 = arith.subf %49, %90 : vector<8x128xf32>
    %cst_25 = arith.constant 4.000000e+01 : f32
    %92 = vector.broadcast %cst_25 : f32 to vector<8x128xf32>
    %93 = arith.mulf %92, %91 : vector<8x128xf32>
    %94 = math.exp %93 : vector<8x128xf32>
    %95 = arith.subf %88, %90 : vector<8x128xf32>
    %cst_26 = arith.constant 4.000000e+01 : f32
    %96 = vector.broadcast %cst_26 : f32 to vector<8x128xf32>
    %97 = arith.mulf %96, %95 : vector<8x128xf32>
    %98 = math.exp %97 : vector<8x128xf32>
    %99 = arith.mulf %49, %94 : vector<8x128xf32>
    %100 = arith.mulf %98, %88 : vector<8x128xf32>
    %101 = arith.addf %99, %100 : vector<8x128xf32>
    %102 = arith.mulf %51, %94 : vector<8x128xf32>
    %103 = arith.addf %102, %98 : vector<8x128xf32>
    %104 = vector.extract_strided_slice %12 {offsets = [0, 58], sizes = [8, 1], strides = [1, 1]} : vector<8x128xf32> to vector<8x1xf32>
    %105 = vector.extract_strided_slice %12 {offsets = [0, 59], sizes = [8, 1], strides = [1, 1]} : vector<8x128xf32> to vector<8x1xf32>
    %106 = vector.extract_strided_slice %12 {offsets = [0, 60], sizes = [8, 1], strides = [1, 1]} : vector<8x128xf32> to vector<8x1xf32>
    %107 = arith.mulf %104, %104 : vector<8x1xf32>
    %108 = arith.mulf %105, %105 : vector<8x1xf32>
    %109 = arith.addf %107, %108 : vector<8x1xf32>
    %110 = arith.mulf %106, %106 : vector<8x1xf32>
    %111 = arith.addf %109, %110 : vector<8x1xf32>
    %cst_27 = arith.constant -2.000000e+00 : f32
    %112 = vector.broadcast %cst_27 : f32 to vector<8x1xf32>
    %113 = arith.mulf %112, %104 : vector<8x1xf32>
    %114 = vector.broadcast %113 : vector<8x1xf32> to vector<8x128xf32>
    %115 = arith.mulf %114, %1 : vector<8x128xf32>
    %cst_28 = arith.constant -2.000000e+00 : f32
    %116 = vector.broadcast %cst_28 : f32 to vector<8x1xf32>
    %117 = arith.mulf %116, %105 : vector<8x1xf32>
    %118 = vector.broadcast %117 : vector<8x1xf32> to vector<8x128xf32>
    %119 = arith.mulf %118, %3 : vector<8x128xf32>
    %120 = arith.addf %115, %119 : vector<8x128xf32>
    %cst_29 = arith.constant -2.000000e+00 : f32
    %121 = vector.broadcast %cst_29 : f32 to vector<8x1xf32>
    %122 = arith.mulf %121, %106 : vector<8x1xf32>
    %123 = vector.broadcast %122 : vector<8x1xf32> to vector<8x128xf32>
    %124 = arith.mulf %123, %5 : vector<8x128xf32>
    %125 = arith.addf %120, %124 : vector<8x128xf32>
    %126 = vector.broadcast %111 : vector<8x1xf32> to vector<8x128xf32>
    %127 = arith.addf %125, %126 : vector<8x128xf32>
    %128 = arith.addf %10, %127 : vector<8x128xf32>
    %cst_30 = arith.constant 2.500000e-01 : f32
    %129 = vector.broadcast %cst_30 : f32 to vector<8x128xf32>
    %130 = arith.subf %129, %128 : vector<8x128xf32>
    %cst_31 = arith.constant 2.500000e+01 : f32
    %131 = vector.broadcast %cst_31 : f32 to vector<8x128xf32>
    %132 = arith.mulf %131, %130 : vector<8x128xf32>
    %133 = arith.negf %132 : vector<8x128xf32>
    %134 = math.exp %133 : vector<8x128xf32>
    %cst_32 = arith.constant 1.000000e+00 : f32
    %135 = vector.broadcast %cst_32 : f32 to vector<8x128xf32>
    %136 = arith.addf %135, %134 : vector<8x128xf32>
    %137 = arith.divf %135, %136 : vector<8x128xf32>
    %138 = vector.extract_strided_slice %11 {offsets = [0, 2], sizes = [8, 1], strides = [1, 1]} : vector<8x128xf32> to vector<8x1xf32>
    %139 = vector.broadcast %138 : vector<8x1xf32> to vector<8x128xf32>
    %140 = arith.mulf %139, %137 : vector<8x128xf32>
    %c16 = arith.constant 16 : index
    %c0_33 = arith.constant 0 : index
    %141 = vector.load %arg5[%c16, %c0_33] : memref<32x128xf32, #tpu.memory_space<vmem>>, vector<8x128xf32>
    tpu.vector_store %arg5[%c16, %c0_33], %140 {strides = array<i32>} : memref<32x128xf32, #tpu.memory_space<vmem>>, vector<8x128xf32>,
    %142 = arith.maximumf %90, %140 : vector<8x128xf32>
    %143 = arith.subf %90, %142 : vector<8x128xf32>
    %cst_34 = arith.constant 4.000000e+01 : f32
    %144 = vector.broadcast %cst_34 : f32 to vector<8x128xf32>
    %145 = arith.mulf %144, %143 : vector<8x128xf32>
    %146 = math.exp %145 : vector<8x128xf32>
    %147 = arith.subf %140, %142 : vector<8x128xf32>
    %cst_35 = arith.constant 4.000000e+01 : f32
    %148 = vector.broadcast %cst_35 : f32 to vector<8x128xf32>
    %149 = arith.mulf %148, %147 : vector<8x128xf32>
    %150 = math.exp %149 : vector<8x128xf32>
    %151 = arith.mulf %101, %146 : vector<8x128xf32>
    %152 = arith.mulf %150, %140 : vector<8x128xf32>
    %153 = arith.addf %151, %152 : vector<8x128xf32>
    %154 = arith.mulf %103, %146 : vector<8x128xf32>
    %155 = arith.addf %154, %150 : vector<8x128xf32>
    %156 = vector.extract_strided_slice %12 {offsets = [0, 87], sizes = [8, 1], strides = [1, 1]} : vector<8x128xf32> to vector<8x1xf32>
    %157 = vector.extract_strided_slice %12 {offsets = [0, 88], sizes = [8, 1], strides = [1, 1]} : vector<8x128xf32> to vector<8x1xf32>
    %158 = vector.extract_strided_slice %12 {offsets = [0, 89], sizes = [8, 1], strides = [1, 1]} : vector<8x128xf32> to vector<8x1xf32>
    %159 = arith.mulf %156, %156 : vector<8x1xf32>
    %160 = arith.mulf %157, %157 : vector<8x1xf32>
    %161 = arith.addf %159, %160 : vector<8x1xf32>
    %162 = arith.mulf %158, %158 : vector<8x1xf32>
    %163 = arith.addf %161, %162 : vector<8x1xf32>
    %cst_36 = arith.constant -2.000000e+00 : f32
    %164 = vector.broadcast %cst_36 : f32 to vector<8x1xf32>
    %165 = arith.mulf %164, %156 : vector<8x1xf32>
    %166 = vector.broadcast %165 : vector<8x1xf32> to vector<8x128xf32>
    %167 = arith.mulf %166, %1 : vector<8x128xf32>
    %cst_37 = arith.constant -2.000000e+00 : f32
    %168 = vector.broadcast %cst_37 : f32 to vector<8x1xf32>
    %169 = arith.mulf %168, %157 : vector<8x1xf32>
    %170 = vector.broadcast %169 : vector<8x1xf32> to vector<8x128xf32>
    %171 = arith.mulf %170, %3 : vector<8x128xf32>
    %172 = arith.addf %167, %171 : vector<8x128xf32>
    %cst_38 = arith.constant -2.000000e+00 : f32
    %173 = vector.broadcast %cst_38 : f32 to vector<8x1xf32>
    %174 = arith.mulf %173, %158 : vector<8x1xf32>
    %175 = vector.broadcast %174 : vector<8x1xf32> to vector<8x128xf32>
    %176 = arith.mulf %175, %5 : vector<8x128xf32>
    %177 = arith.addf %172, %176 : vector<8x128xf32>
    %178 = vector.broadcast %163 : vector<8x1xf32> to vector<8x128xf32>
    %179 = arith.addf %177, %178 : vector<8x128xf32>
    %180 = arith.addf %10, %179 : vector<8x128xf32>
    %cst_39 = arith.constant 2.500000e-01 : f32
    %181 = vector.broadcast %cst_39 : f32 to vector<8x128xf32>
    %182 = arith.subf %181, %180 : vector<8x128xf32>
    %cst_40 = arith.constant 2.500000e+01 : f32
    %183 = vector.broadcast %cst_40 : f32 to vector<8x128xf32>
    %184 = arith.mulf %183, %182 : vector<8x128xf32>
    %185 = arith.negf %184 : vector<8x128xf32>
    %186 = math.exp %185 : vector<8x128xf32>
    %cst_41 = arith.constant 1.000000e+00 : f32
    %187 = vector.broadcast %cst_41 : f32 to vector<8x128xf32>
    %188 = arith.addf %187, %186 : vector<8x128xf32>
    %189 = arith.divf %187, %188 : vector<8x128xf32>
    %190 = vector.extract_strided_slice %11 {offsets = [0, 3], sizes = [8, 1], strides = [1, 1]} : vector<8x128xf32> to vector<8x1xf32>
    %191 = vector.broadcast %190 : vector<8x1xf32> to vector<8x128xf32>
    %192 = arith.mulf %191, %189 : vector<8x128xf32>
    %c24 = arith.constant 24 : index
    %c0_42 = arith.constant 0 : index
    %193 = vector.load %arg5[%c24, %c0_42] : memref<32x128xf32, #tpu.memory_space<vmem>>, vector<8x128xf32>
    tpu.vector_store %arg5[%c24, %c0_42], %192 {strides = array<i32>} : memref<32x128xf32, #tpu.memory_space<vmem>>, vector<8x128xf32>,
    %194 = arith.maximumf %142, %192 : vector<8x128xf32>
    %195 = arith.subf %142, %194 : vector<8x128xf32>
    %cst_43 = arith.constant 4.000000e+01 : f32
    %196 = vector.broadcast %cst_43 : f32 to vector<8x128xf32>
    %197 = arith.mulf %196, %195 : vector<8x128xf32>
    %198 = math.exp %197 : vector<8x128xf32>
    %199 = arith.subf %192, %194 : vector<8x128xf32>
    %cst_44 = arith.constant 4.000000e+01 : f32
    %200 = vector.broadcast %cst_44 : f32 to vector<8x128xf32>
    %201 = arith.mulf %200, %199 : vector<8x128xf32>
    %202 = math.exp %201 : vector<8x128xf32>
    %203 = arith.mulf %153, %198 : vector<8x128xf32>
    %204 = arith.mulf %202, %192 : vector<8x128xf32>
    %205 = arith.addf %203, %204 : vector<8x128xf32>
    %206 = arith.mulf %155, %198 : vector<8x128xf32>
    %207 = arith.addf %206, %202 : vector<8x128xf32>
    %208 = tpu.reciprocal %207 {approx = true} : vector<8x128xf32> -> vector<8x128xf32>
    %209 = arith.mulf %205, %208 : vector<8x128xf32>
    %c0_45 = arith.constant 0 : index
    %c0_46 = arith.constant 0 : index
    %210 = vector.load %arg4[%c0_45, %c0_46] : memref<8x128xf32, #tpu.memory_space<vmem>>, vector<8x128xf32>
    tpu.vector_store %arg4[%c0_45, %c0_46], %209 {strides = array<i32>} : memref<8x128xf32, #tpu.memory_space<vmem>>, vector<8x128xf32>,
    return
  }
  func.func @transform_0(%arg0: i32) -> (i32, i32, i32) {
    %c0_i32 = arith.constant 0 : i32
    %c0_i32_0 = arith.constant 0 : i32
    %c0_i32_1 = arith.constant 0 : i32
    return %c0_i32, %c0_i32_0, %arg0 : i32, i32, i32
  }
  func.func @transform_1(%arg0: i32) -> (i32, i32) {
    %c0_i32 = arith.constant 0 : i32
    %c0_i32_0 = arith.constant 0 : i32
    %c0_i32_1 = arith.constant 0 : i32
    return %c0_i32, %c0_i32_0 : i32, i32
  }
  func.func @transform_2(%arg0: i32) -> (i32, i32) {
    %c0_i32 = arith.constant 0 : i32
    %c0_i32_0 = arith.constant 0 : i32
    %c0_i32_1 = arith.constant 0 : i32
    return %c0_i32, %c0_i32_0 : i32, i32
  }
  func.func @transform_3(%arg0: i32) -> (i32, i32) {
    %c0_i32 = arith.constant 0 : i32
    %c0_i32_0 = arith.constant 0 : i32
    return %c0_i32, %arg0 : i32, i32
  }
  func.func @transform_4(%arg0: i32) -> (i32, i32) {
    %c0_i32 = arith.constant 0 : i32
    %c0_i32_0 = arith.constant 0 : i32
    return %c0_i32, %arg0 : i32, i32
  }
}

module attributes {stable_mosaic.version = 11 : i64} {
  func.func @encode_decode_kernel(%arg0: memref<8x3x128xf32, #tpu.memory_space<vmem>>, %arg1: memref<32x3xf32, #tpu.memory_space<vmem>>, %arg2: memref<32x1xf32, #tpu.memory_space<vmem>>, %arg3: memref<32x64xbf16, #tpu.memory_space<vmem>>, %arg4: memref<1x64xf32, #tpu.memory_space<vmem>>, %arg5: memref<64x128xbf16, #tpu.memory_space<vmem>>, %arg6: memref<1x128xf32, #tpu.memory_space<vmem>>, %arg7: memref<128x256xbf16, #tpu.memory_space<vmem>>, %arg8: memref<1x256xf32, #tpu.memory_space<vmem>>, %arg9: memref<256x128xbf16, #tpu.memory_space<vmem>>, %arg10: memref<1x128xf32, #tpu.memory_space<vmem>>, %arg11: memref<256x128xbf16, #tpu.memory_space<vmem>>, %arg12: memref<1x128xf32, #tpu.memory_space<vmem>>, %arg13: memref<1x128xf32, #tpu.memory_space<vmem>>, %arg14: memref<1x128xf32, #tpu.memory_space<vmem>>, %arg15: memref<8x128xf32, #tpu.memory_space<vmem>>, %arg16: memref<8x128xf32, #tpu.memory_space<vmem>>) attributes {dimension_semantics = [], scalar_prefetch = 0 : i64, scratch_operands = 0 : i64, tpu.core_type = #tpu.core_type<tc>} {
    %c0 = arith.constant 0 : index
    %c0_0 = arith.constant 0 : index
    %0 = vector.load %arg1[%c0, %c0_0] : memref<32x3xf32, #tpu.memory_space<vmem>>, vector<32x3xf32>
    %c0_1 = arith.constant 0 : index
    %c0_2 = arith.constant 0 : index
    %1 = vector.load %arg2[%c0_1, %c0_2] : memref<32x1xf32, #tpu.memory_space<vmem>>, vector<32x1xf32>
    %c0_3 = arith.constant 0 : index
    %c0_4 = arith.constant 0 : index
    %c0_5 = arith.constant 0 : index
    %2 = vector.load %arg0[%c0_3, %c0_4, %c0_5] : memref<8x3x128xf32, #tpu.memory_space<vmem>>, vector<8x3x128xf32>
    %3 = vector.extract_strided_slice %0 {offsets = [0, 0], sizes = [32, 1], strides = [1, 1]} : vector<32x3xf32> to vector<32x1xf32>
    %4 = vector.shape_cast %3 : vector<32x1xf32> to vector<1x32x1xf32>
    %5 = vector.extract_strided_slice %2 {offsets = [0, 0, 0], sizes = [8, 1, 128], strides = [1, 1, 1]} : vector<8x3x128xf32> to vector<8x1x128xf32>
    %6 = vector.broadcast %4 : vector<1x32x1xf32> to vector<8x32x128xf32>
    %7 = vector.broadcast %5 : vector<8x1x128xf32> to vector<8x32x128xf32>
    %8 = arith.mulf %6, %7 : vector<8x32x128xf32>
    %9 = vector.extract_strided_slice %0 {offsets = [0, 1], sizes = [32, 1], strides = [1, 1]} : vector<32x3xf32> to vector<32x1xf32>
    %10 = vector.shape_cast %9 : vector<32x1xf32> to vector<1x32x1xf32>
    %11 = vector.extract_strided_slice %2 {offsets = [0, 1, 0], sizes = [8, 1, 128], strides = [1, 1, 1]} : vector<8x3x128xf32> to vector<8x1x128xf32>
    %12 = vector.broadcast %10 : vector<1x32x1xf32> to vector<8x32x128xf32>
    %13 = vector.broadcast %11 : vector<8x1x128xf32> to vector<8x32x128xf32>
    %14 = arith.mulf %12, %13 : vector<8x32x128xf32>
    %15 = arith.addf %8, %14 : vector<8x32x128xf32>
    %16 = vector.extract_strided_slice %0 {offsets = [0, 2], sizes = [32, 1], strides = [1, 1]} : vector<32x3xf32> to vector<32x1xf32>
    %17 = vector.shape_cast %16 : vector<32x1xf32> to vector<1x32x1xf32>
    %18 = vector.extract_strided_slice %2 {offsets = [0, 2, 0], sizes = [8, 1, 128], strides = [1, 1, 1]} : vector<8x3x128xf32> to vector<8x1x128xf32>
    %19 = vector.broadcast %17 : vector<1x32x1xf32> to vector<8x32x128xf32>
    %20 = vector.broadcast %18 : vector<8x1x128xf32> to vector<8x32x128xf32>
    %21 = arith.mulf %19, %20 : vector<8x32x128xf32>
    %22 = arith.addf %15, %21 : vector<8x32x128xf32>
    %23 = vector.shape_cast %1 : vector<32x1xf32> to vector<1x32x1xf32>
    %24 = vector.broadcast %23 : vector<1x32x1xf32> to vector<8x32x128xf32>
    %25 = arith.addf %22, %24 : vector<8x32x128xf32>
    %cst = arith.constant 0.000000e+00 : f32
    %26 = vector.broadcast %cst : f32 to vector<8x32x128xf32>
    %27 = arith.maximumf %25, %26 : vector<8x32x128xf32>
    %cst_6 = arith.constant dense<0xFF800000> : vector<8x32xf32>
    %28 = vector.multi_reduction <maximumf>, %27, %cst_6 [2] : vector<8x32x128xf32> to vector<8x32xf32>
    %29 = arith.truncf %28 : vector<8x32xf32> to vector<8x32xbf16>
    %c0_7 = arith.constant 0 : index
    %c0_8 = arith.constant 0 : index
    %30 = vector.load %arg3[%c0_7, %c0_8] : memref<32x64xbf16, #tpu.memory_space<vmem>>, vector<32x64xbf16>
    %cst_9 = arith.constant dense<0.000000e+00> : vector<8x64xf32>
    %31 = tpu.matmul %29, %30, %cst_9 {dimension_numbers = #tpu.dot_dimension_numbers<[1], [0], [0], [1], [0, 0, 1, 1], [], []>} : vector<8x32xbf16>, vector<32x64xbf16>, vector<8x64xf32> -> vector<8x64xf32>
    %c0_10 = arith.constant 0 : index
    %c0_11 = arith.constant 0 : index
    %32 = vector.load %arg4[%c0_10, %c0_11] : memref<1x64xf32, #tpu.memory_space<vmem>>, vector<1x64xf32>
    %33 = vector.broadcast %32 : vector<1x64xf32> to vector<8x64xf32>
    %34 = arith.addf %31, %33 : vector<8x64xf32>
    %cst_12 = arith.constant 0.000000e+00 : f32
    %35 = vector.broadcast %cst_12 : f32 to vector<8x64xf32>
    %36 = arith.cmpf oge, %34, %35 : vector<8x64xf32>
    %cst_13 = arith.constant 0.00999999977 : f32
    %37 = vector.broadcast %cst_13 : f32 to vector<8x64xf32>
    %38 = arith.mulf %37, %34 : vector<8x64xf32>
    %39 = arith.select %36, %34, %38 : vector<8x64xi1>, vector<8x64xf32>
    %40 = arith.truncf %39 : vector<8x64xf32> to vector<8x64xbf16>
    %c0_14 = arith.constant 0 : index
    %c0_15 = arith.constant 0 : index
    %41 = vector.load %arg5[%c0_14, %c0_15] : memref<64x128xbf16, #tpu.memory_space<vmem>>, vector<64x128xbf16>
    %cst_16 = arith.constant dense<0.000000e+00> : vector<8x128xf32>
    %42 = tpu.matmul %40, %41, %cst_16 {dimension_numbers = #tpu.dot_dimension_numbers<[1], [0], [0], [1], [0, 0, 1, 1], [], []>} : vector<8x64xbf16>, vector<64x128xbf16>, vector<8x128xf32> -> vector<8x128xf32>
    %c0_17 = arith.constant 0 : index
    %c0_18 = arith.constant 0 : index
    %43 = vector.load %arg6[%c0_17, %c0_18] : memref<1x128xf32, #tpu.memory_space<vmem>>, vector<1x128xf32>
    %44 = vector.broadcast %43 : vector<1x128xf32> to vector<8x128xf32>
    %45 = arith.addf %42, %44 : vector<8x128xf32>
    %cst_19 = arith.constant 0.000000e+00 : f32
    %46 = vector.broadcast %cst_19 : f32 to vector<8x128xf32>
    %47 = arith.cmpf oge, %45, %46 : vector<8x128xf32>
    %cst_20 = arith.constant 0.00999999977 : f32
    %48 = vector.broadcast %cst_20 : f32 to vector<8x128xf32>
    %49 = arith.mulf %48, %45 : vector<8x128xf32>
    %50 = arith.select %47, %45, %49 : vector<8x128xi1>, vector<8x128xf32>
    %51 = arith.truncf %50 : vector<8x128xf32> to vector<8x128xbf16>
    %c0_21 = arith.constant 0 : index
    %c0_22 = arith.constant 0 : index
    %52 = vector.load %arg7[%c0_21, %c0_22] : memref<128x256xbf16, #tpu.memory_space<vmem>>, vector<128x256xbf16>
    %cst_23 = arith.constant dense<0.000000e+00> : vector<8x256xf32>
    %53 = tpu.matmul %51, %52, %cst_23 {dimension_numbers = #tpu.dot_dimension_numbers<[1], [0], [0], [1], [0, 0, 1, 1], [], []>} : vector<8x128xbf16>, vector<128x256xbf16>, vector<8x256xf32> -> vector<8x256xf32>
    %c0_24 = arith.constant 0 : index
    %c0_25 = arith.constant 0 : index
    %54 = vector.load %arg8[%c0_24, %c0_25] : memref<1x256xf32, #tpu.memory_space<vmem>>, vector<1x256xf32>
    %55 = vector.broadcast %54 : vector<1x256xf32> to vector<8x256xf32>
    %56 = arith.addf %53, %55 : vector<8x256xf32>
    %cst_26 = arith.constant 0.000000e+00 : f32
    %57 = vector.broadcast %cst_26 : f32 to vector<8x256xf32>
    %58 = arith.cmpf oge, %56, %57 : vector<8x256xf32>
    %cst_27 = arith.constant 0.00999999977 : f32
    %59 = vector.broadcast %cst_27 : f32 to vector<8x256xf32>
    %60 = arith.mulf %59, %56 : vector<8x256xf32>
    %61 = arith.select %58, %56, %60 : vector<8x256xi1>, vector<8x256xf32>
    %62 = arith.truncf %61 : vector<8x256xf32> to vector<8x256xbf16>
    %c0_28 = arith.constant 0 : index
    %c0_29 = arith.constant 0 : index
    %63 = vector.load %arg9[%c0_28, %c0_29] : memref<256x128xbf16, #tpu.memory_space<vmem>>, vector<256x128xbf16>
    %cst_30 = arith.constant dense<0.000000e+00> : vector<8x128xf32>
    %64 = tpu.matmul %62, %63, %cst_30 {dimension_numbers = #tpu.dot_dimension_numbers<[1], [0], [0], [1], [0, 0, 1, 1], [], []>} : vector<8x256xbf16>, vector<256x128xbf16>, vector<8x128xf32> -> vector<8x128xf32>
    %c0_31 = arith.constant 0 : index
    %c0_32 = arith.constant 0 : index
    %65 = vector.load %arg10[%c0_31, %c0_32] : memref<1x128xf32, #tpu.memory_space<vmem>>, vector<1x128xf32>
    %66 = vector.broadcast %65 : vector<1x128xf32> to vector<8x128xf32>
    %67 = arith.addf %64, %66 : vector<8x128xf32>
    %68 = arith.negf %67 : vector<8x128xf32>
    %69 = math.exp %68 : vector<8x128xf32>
    %cst_33 = arith.constant 1.000000e+00 : f32
    %70 = vector.broadcast %cst_33 : f32 to vector<8x128xf32>
    %71 = arith.addf %70, %69 : vector<8x128xf32>
    %72 = arith.divf %70, %71 : vector<8x128xf32>
    %c0_34 = arith.constant 0 : index
    %c0_35 = arith.constant 0 : index
    %73 = vector.load %arg15[%c0_34, %c0_35] : memref<8x128xf32, #tpu.memory_space<vmem>>, vector<8x128xf32>
    tpu.vector_store %arg15[%c0_34, %c0_35], %72 {strides = array<i32>} : memref<8x128xf32, #tpu.memory_space<vmem>>, vector<8x128xf32>,
    %74 = arith.truncf %61 : vector<8x256xf32> to vector<8x256xbf16>
    %c0_36 = arith.constant 0 : index
    %c0_37 = arith.constant 0 : index
    %75 = vector.load %arg11[%c0_36, %c0_37] : memref<256x128xbf16, #tpu.memory_space<vmem>>, vector<256x128xbf16>
    %cst_38 = arith.constant dense<0.000000e+00> : vector<8x128xf32>
    %76 = tpu.matmul %74, %75, %cst_38 {dimension_numbers = #tpu.dot_dimension_numbers<[1], [0], [0], [1], [0, 0, 1, 1], [], []>} : vector<8x256xbf16>, vector<256x128xbf16>, vector<8x128xf32> -> vector<8x128xf32>
    %c0_39 = arith.constant 0 : index
    %c0_40 = arith.constant 0 : index
    %77 = vector.load %arg12[%c0_39, %c0_40] : memref<1x128xf32, #tpu.memory_space<vmem>>, vector<1x128xf32>
    %78 = vector.broadcast %77 : vector<1x128xf32> to vector<8x128xf32>
    %79 = arith.addf %76, %78 : vector<8x128xf32>
    %80 = arith.negf %79 : vector<8x128xf32>
    %81 = math.exp %80 : vector<8x128xf32>
    %cst_41 = arith.constant 1.000000e+00 : f32
    %82 = vector.broadcast %cst_41 : f32 to vector<8x128xf32>
    %83 = arith.addf %82, %81 : vector<8x128xf32>
    %84 = arith.divf %82, %83 : vector<8x128xf32>
    %c0_42 = arith.constant 0 : index
    %c0_43 = arith.constant 0 : index
    %85 = vector.load %arg13[%c0_42, %c0_43] : memref<1x128xf32, #tpu.memory_space<vmem>>, vector<1x128xf32>
    %86 = vector.broadcast %85 : vector<1x128xf32> to vector<8x128xf32>
    %87 = arith.mulf %84, %86 : vector<8x128xf32>
    %c0_44 = arith.constant 0 : index
    %c0_45 = arith.constant 0 : index
    %88 = vector.load %arg14[%c0_44, %c0_45] : memref<1x128xf32, #tpu.memory_space<vmem>>, vector<1x128xf32>
    %89 = vector.broadcast %88 : vector<1x128xf32> to vector<8x128xf32>
    %90 = arith.addf %87, %89 : vector<8x128xf32>
    %c0_46 = arith.constant 0 : index
    %c0_47 = arith.constant 0 : index
    %91 = vector.load %arg16[%c0_46, %c0_47] : memref<8x128xf32, #tpu.memory_space<vmem>>, vector<8x128xf32>
    tpu.vector_store %arg16[%c0_46, %c0_47], %90 {strides = array<i32>} : memref<8x128xf32, #tpu.memory_space<vmem>>, vector<8x128xf32>,
    return
  }
}

</mosaic_0001>

<bundles_post_ra>
// kernel: sweepnet_pcd_forward.3
= control target key start
LH: loop header
LB: loop body
LE: loop exit
PB: predicated region body
PF: predicated region fallthrough
CT: control target
= control target key end

     0   :  { %v314_v1 = vmov 0   ;;  %v315_v4 = vmov 29   ;;  %s316_s17 = smov 127   ;;  %s317_s18 = smov 126   ;;  %v318_v5 = vmov 1   ;;  %v319_v6 = vmov 30   ;;  %s384_s2 = inlined_call_operand.vmem [shape: f32[8,128], index: 2, kind: input, shape index: {}]   ;;  %s385_s1 = inlined_call_operand.vmem [shape: f32[8,128], index: 1, kind: input, shape index: {}]   ;;  %s386_s0 = inlined_call_operand.vmem [shape: f32[3,8,128], index: 0, kind: input, shape index: {}]   ;;  %s387_s4 = inlined_call_operand.vmem [shape: f32[32,128], index: 4, kind: output, shape index: {1}]   ;;  %s388_s3 = inlined_call_operand.vmem [shape: f32[8,128], index: 3, kind: output, shape index: {0}]  }
   0x1   :  { %v27_v0 = vld [vmem:[%s384_s2] sm:$0xff]  ;;  %263 = vset.pattern.permute.xlu1 %v314_v1  ;;  %265 = vset.pattern.permute.xlu0 %v315_v4  ;;  %v320_v7 = vmov 31   ;;  %v321_v8 = vmov 2   ;;  %v322_v9 = vmov 60   ;;  %v323_v10 = vmov 58   ;;  %v242_v28 = vld [vmem:[%s386_s0 + $0x8] sm:$0xff] }
   0x2   :  { %v28_v2 = vmul.f32 %v27_v0, %v27_v0  ;;  %v38_v3 = vmul.f32 -2.0, %v27_v0  ;;  %v324_v11 = vmov 87   ;;  %v325_v12 = vmov 59   ;;  %v26_v15 = vld [vmem:[%s385_s1] sm:$0xff]  ;;  %v243_v34 = vld [vmem:[%s386_s0 + $0x10] sm:$0xff] }
   0x3   :  { %v326_v13 = vmov 89   ;;  %v327_v14 = vmov 88   ;;  %v328_v16 = vmov 3   ;;  %v16_v27 = vld [vmem:[%s386_s0] sm:$0xff]  ;;  %v22_v32 = vmul.f32 %v242_v28, %v242_v28 }
   0x4   :  { %30 = vrot.lane.b32.xlu0 %v28_v2, %s316_s17  ;;  %41 = vperm.xlu1 %263, %v38_v3   ;;  %v21_v30 = vmul.f32 %v16_v27, %v16_v27  ;;  %v24_v40 = vmul.f32 %v243_v34, %v243_v34 }
   0x6   :  { %v23_v39 = vadd.f32 %v22_v32, %v21_v30 }
   0x8   :  { %34 = vrot.lane.b32.xlu0 %v28_v2, %s317_s18  ;;  %264 = vset.pattern.permute.xlu1 %v318_v5  ;;  %v25_v44 = vadd.f32 %v24_v40, %v23_v39 }
   0x9   :  { %46 = vperm.xlu1 %264, %v38_v3  }
   0xc   :  { %80 = vperm.xlu0 %265, %v38_v3  }
   0xd   :  { %266 = vset.pattern.permute.xlu1 %v319_v6 }
   0xe   :  { %85 = vperm.xlu1 %266, %v38_v3  }
  0x10   :  { %268 = vset.pattern.permute.xlu0 %v320_v7 }
  0x11   :  { %91 = vperm.xlu0 %268, %v38_v3  }
  0x12   :  { %267 = vset.pattern.permute.xlu1 %v321_v8 }
  0x13   :  { %52 = vperm.xlu1 %267, %v38_v3  }
  0x15   :  { %271 = vset.pattern.permute.xlu0 %v322_v9 }
  0x16   :  { %141 = vperm.xlu0 %271, %v38_v3  }
  0x17   :  { %269 = vset.pattern.permute.xlu1 %v323_v10 }
  0x18   :  { %130 = vperm.xlu1 %269, %v38_v3  }
  0x1a   :  { %272 = vset.pattern.permute.xlu0 %v324_v11 }
  0x1b   :  { %181 = vperm.xlu0 %272, %v38_v3  }
  0x1c   :  { %270 = vset.pattern.permute.xlu1 %v325_v12 }
  0x1d   :  { %135 = vperm.xlu1 %270, %v38_v3  }
  0x1f   :  { %274 = vset.pattern.permute.xlu0 %v326_v13 }
  0x20   :  { %192 = vperm.xlu0 %274, %v38_v3  }
  0x21   :  { %273 = vset.pattern.permute.xlu1 %v327_v14 }
  0x22   :  { %186 = vperm.xlu1 %273, %v38_v3  }
  0x24   :  { %280 = vset.pattern.permute.xlu0 %v318_v5 }
  0x25   :  { %111 = vperm.xlu0 %280, %v26_v15  }
  0x26   :  { %275 = vset.pattern.permute.xlu1 %v314_v1 }
  0x29   :  { %283 = vset.pattern.permute.xlu0 %v328_v16 }
  0x76   :  { %v31_v17 = vpop.permute.xlu0 %30 }
  0x77   :  { %v33_v18 = vadd.f32 %v31_v17, %v28_v2 }
  0x7a   :  { %v35_v19 = vpop.permute.xlu0 %34 }
  0x7b   :  { %v37_v20 = vadd.f32 %v35_v19, %v33_v18 }
  0x7d   :  { %59 = vperm.xlu1 %275, %v37_v20  }
  0x7f   :  { %v42_v21 = vpop.permute.xlu1 %41 }
  0x80   :  { %v44_v31 = vmul.f32 %v42_v21, %v16_v27 }
  0x81   :  { %276 = vset.pattern.permute.xlu1 %v315_v4 }
  0x82   :  { %97 = vperm.xlu1 %276, %v37_v20  }
  0x84   :  { %v47_v22 = vpop.permute.xlu1 %46 }
  0x85   :  { %v49_v33 = vmul.f32 %v242_v28, %v47_v22 }
  0x86   :  { %277 = vset.pattern.permute.xlu1 %v323_v10 }
  0x87   :  { %147 = vperm.xlu1 %277, %v37_v20   ;;  %v81_v26 = vpop.permute.xlu0 %80  ;;  %v50_v37 = vadd.f32 %v49_v33, %v44_v31 }
  0x88   :  { %v83_v42 = vmul.f32 %v81_v26, %v16_v27 }
  0x89   :  { %v86_v23 = vpop.permute.xlu1 %85 }
  0x8a   :  { %v88_v41 = vmul.f32 %v242_v28, %v86_v23 }
  0x8b   :  { %278 = vset.pattern.permute.xlu1 %v324_v11 }
  0x8c   :  { %198 = vperm.xlu1 %278, %v37_v20   ;;  %v92_v35 = vpop.permute.xlu0 %91  ;;  %v89_v46 = vadd.f32 %v88_v41, %v83_v42 }
  0x8d   :  { %v94_v47 = vmul.f32 %v243_v34, %v92_v35 }
  0x8e   :  { %v53_v24 = vpop.permute.xlu1 %52 }
  0x8f   :  { %v55_v38 = vmul.f32 %v243_v34, %v53_v24  ;;  %v95_v54 = vadd.f32 %v94_v47, %v89_v46 }
  0x90   :  { %279 = vset.pattern.permute.xlu1 %v314_v1 }
  0x91   :  { %74 = vperm.xlu1 %279, %v26_v15   ;;  %v142_v43 = vpop.permute.xlu0 %141  ;;  %v56_v45 = vadd.f32 %v55_v38, %v50_v37 }
  0x92   :  { %v144_v56 = vmul.f32 %v243_v34, %v142_v43 }
  0x93   :  { %v131_v25 = vpop.permute.xlu1 %130 }
  0x94   :  { %v133_v49 = vmul.f32 %v131_v25, %v16_v27 }
  0x95   :  { %281 = vset.pattern.permute.xlu1 %v321_v8 }
  0x96   :  { %161 = vperm.xlu1 %281, %v26_v15   ;;  %v182_v51 = vpop.permute.xlu0 %181 }
  0x97   :  { %v184_v59 = vmul.f32 %v182_v51, %v16_v27 }
  0x98   :  { %v136_v29 = vpop.permute.xlu1 %135 }
  0x99   :  { %v138_v50 = vmul.f32 %v242_v28, %v136_v29 }
  0x9a   :  { %282 = vset.pattern.permute.xlu1 %v328_v16 }
  0x9b   :  { %212 = vperm.xlu1 %282, %v26_v15   ;;  %v139_v55 = vadd.f32 %v138_v50, %v133_v49  ;;  %v193_v62 = vpop.permute.xlu0 %192 }
  0x9c   :  { %v195_v4 = vmul.f32 %v243_v34, %v193_v62 }
  0x9d   :  { %v187_v36 = vpop.permute.xlu1 %186  ;;  %v145_v2 = vadd.f32 %v144_v56, %v139_v55 }
  0x9e   :  { %v189_v60 = vmul.f32 %v242_v28, %v187_v36 }
  0xa0   :  { %v190_v3 = vadd.f32 %v189_v60, %v184_v59  ;;  %v112_v32 = vpop.permute.xlu0 %111 }
  0xa2   :  { %v196_v11 = vadd.f32 %v195_v4, %v190_v3 }
  0xf8   :  { %v60_v48 = vpop.permute.xlu1 %59 }
  0xf9   :  { %v62_v52 = vadd.f32 %v60_v48, %v56_v45 }
  0xfb   :  { %v63_v53 = vadd.f32 %v62_v52, %v25_v44 }
  0xfd   :  { %v64_v57 = vsub.f32 0.25, %v63_v53  ;;  %v98_v58 = vpop.permute.xlu1 %97 }
  0xfe   :  { %v100_v61 = vadd.f32 %v98_v58, %v95_v54 }
  0xff   :  { %v244_v63 = vmul.f32 -25.0, %v64_v57 }
 0x100   :  { %v101_v0 = vadd.f32 %v100_v61, %v25_v44 }
 0x101   :  { %v67_v1 = vmul.f32 1.442695, %v244_v63 }
 0x102   :  { %v102_v5 = vsub.f32 0.25, %v101_v0  ;;  %v148_v6 = vpop.permute.xlu1 %147 }
 0x103   :  { %284 = vpow2.f32 %v67_v1  ;;  %v150_v7 = vadd.f32 %v148_v6, %v145_v2 }
 0x104   :  { %v245_v8 = vmul.f32 -25.0, %v102_v5 }
 0x105   :  { %v151_v9 = vadd.f32 %v150_v7, %v25_v44 }
 0x106   :  { %v105_v10 = vmul.f32 1.442695, %v245_v8 }
 0x107   :  { %v152_v12 = vsub.f32 0.25, %v151_v9  ;;  %v199_v13 = vpop.permute.xlu1 %198 }
 0x108   :  { %286 = vpow2.f32 %v105_v10  ;;  %v201_v14 = vadd.f32 %v199_v13, %v196_v11 }
 0x109   :  { %v246_v15 = vmul.f32 -25.0, %v152_v12 }
 0x10a   :  { %v202_v16 = vadd.f32 %v201_v14, %v25_v44 }
 0x10b   :  { %v155_v17 = vmul.f32 1.442695, %v246_v15 }
 0x10c   :  { %v203_v18 = vsub.f32 0.25, %v202_v16  ;;  %v75_v27 = vpop.permute.xlu1 %74 }
 0x10d   :  { %288 = vpow2.f32 %v155_v17 }
 0x10e   :  { %v247_v19 = vmul.f32 -25.0, %v203_v18 }
 0x110   :  { %v285_v20 = vpop.eup %284  ;;  %v206_v21 = vmul.f32 1.442695, %v247_v19 }
 0x111   :  { %v69_v22 = vadd.f32 1.0, %v285_v20  ;;  %v162_v35 = vpop.permute.xlu1 %161 }
 0x112   :  { %290 = vpow2.f32 %v206_v21 }
 0x113   :  { %292 = vrcp.f32 %v69_v22 }
 0x115   :  { %v287_v23 = vpop.eup %286 }
 0x116   :  { %v107_v24 = vadd.f32 1.0, %v287_v23  ;;  %v213_v44 = vpop.permute.xlu1 %212 }
 0x118   :  { %294 = vrcp.f32 %v107_v24 }
 0x11a   :  { %v289_v25 = vpop.eup %288 }
 0x11b   :  { %v157_v26 = vadd.f32 1.0, %v289_v25 }
 0x11d   :  { %296 = vrcp.f32 %v157_v26 }
 0x11f   :  { %v291_v28 = vpop.eup %290 }
 0x120   :  { %v293_v29 = vpop.eup %292  ;;  %v208_v30 = vadd.f32 1.0, %v291_v28 }
 0x121   :  { %v77_v31 = vmul.f32 %v293_v29, %v75_v27 }
 0x122   :  { %298 = vrcp.f32 %v208_v30 }
 0x123   :  { %78 = vst [vmem:[%s387_s4] sm:$0xff] %v77_v31 }
 0x125   :  { %v295_v33 = vpop.eup %294 }
 0x126   :  { %v114_v34 = vmul.f32 %v295_v33, %v112_v32 }
 0x128   :  { %115 = vst [vmem:[%s387_s4 + $0x8] sm:$0xff] %v114_v34  ;;  %v116_v36 = vmax.f32 %v77_v31, %v114_v34 }
 0x12a   :  { %v297_v37 = vpop.eup %296  ;;  %v117_v38 = vsub.f32 %v77_v31, %v116_v36  ;;  %v121_v39 = vsub.f32 %v114_v34, %v116_v36 }
 0x12b   :  { %v164_v40 = vmul.f32 %v297_v37, %v162_v35 }
 0x12c   :  { %v118_v41 = vmul.f32 40.0, %v117_v38  ;;  %v122_v42 = vmul.f32 40.0, %v121_v39 }
 0x12d   :  { %165 = vst [vmem:[%s387_s4 + $0x10] sm:$0xff] %v164_v40  ;;  %v166_v43 = vmax.f32 %v116_v36, %v164_v40 }
 0x12e   :  { %v119_v45 = vmul.f32 1.442695, %v118_v41  ;;  %v123_v46 = vmul.f32 1.442695, %v122_v42 }
 0x12f   :  { %v299_v47 = vpop.eup %298  ;;  %v167_v48 = vsub.f32 %v116_v36, %v166_v43  ;;  %v171_v49 = vsub.f32 %v164_v40, %v166_v43 }
 0x130   :  { %300 = vpow2.f32 %v119_v45  ;;  %v215_v50 = vmul.f32 %v299_v47, %v213_v44 }
 0x131   :  { %302 = vpow2.f32 %v123_v46  ;;  %v168_v51 = vmul.f32 40.0, %v167_v48  ;;  %v172_v52 = vmul.f32 40.0, %v171_v49 }
 0x132   :  { %216 = vst [vmem:[%s387_s4 + $0x18] sm:$0xff] %v215_v50  ;;  %v217_v53 = vmax.f32 %v166_v43, %v215_v50 }
 0x133   :  { %v169_v54 = vmul.f32 1.442695, %v168_v51  ;;  %v173_v55 = vmul.f32 1.442695, %v172_v52 }
 0x134   :  { %v218_v56 = vsub.f32 %v166_v43, %v217_v53  ;;  %v222_v57 = vsub.f32 %v215_v50, %v217_v53 }
 0x135   :  { %304 = vpow2.f32 %v169_v54 }
 0x136   :  { %v219_v58 = vmul.f32 40.0, %v218_v56  ;;  %v223_v59 = vmul.f32 40.0, %v222_v57  ;;  %306 = vpow2.f32 %v173_v55 }
 0x138   :  { %v220_v60 = vmul.f32 1.442695, %v219_v58  ;;  %v224_v61 = vmul.f32 1.442695, %v223_v59 }
 0x13a   :  { %308 = vpow2.f32 %v220_v60 }
 0x13b   :  { %310 = vpow2.f32 %v224_v61 }
 0x13d   :  { %v301_v62 = vpop.eup %300 }
 0x13e   :  { %v303_v63 = vpop.eup %302  ;;  %v125_v4 = vmul.f32 %v301_v62, %v77_v31 }
 0x13f   :  { %v128_v0 = vadd.f32 %v303_v63, %v301_v62  ;;  %v126_v5 = vmul.f32 %v303_v63, %v114_v34 }
 0x141   :  { %v127_v8 = vadd.f32 %v126_v5, %v125_v4 }
 0x142   :  { %v305_v1 = vpop.eup %304 }
 0x143   :  { %v178_v2 = vmul.f32 %v305_v1, %v128_v0  ;;  %v307_v3 = vpop.eup %306  ;;  %v175_v12 = vmul.f32 %v305_v1, %v127_v8 }
 0x144   :  { %v176_v13 = vmul.f32 %v307_v3, %v164_v40 }
 0x145   :  { %v179_v6 = vadd.f32 %v307_v3, %v178_v2 }
 0x146   :  { %v177_v14 = vadd.f32 %v176_v13, %v175_v12 }
 0x147   :  { %v309_v7 = vpop.eup %308 }
 0x148   :  { %v229_v9 = vmul.f32 %v309_v7, %v179_v6  ;;  %v311_v10 = vpop.eup %310  ;;  %v226_v15 = vmul.f32 %v309_v7, %v177_v14 }
 0x149   :  { %v227_v16 = vmul.f32 %v311_v10, %v215_v50 }
 0x14a   :  { %v230_v11 = vadd.f32 %v311_v10, %v229_v9 }
 0x14b   :  { %v228_v17 = vadd.f32 %v227_v16, %v226_v15 }
 0x14c   :  { %312 = vrcp.f32 %v230_v11 }
 0x159   :  { %v313_v18 = vpop.eup %312 }
 0x15a   :  { %v232_v19 = vmul.f32 %v313_v18, %v228_v17 }
 0x15c   :  { %233 = vst [vmem:[%s388_s3] sm:$0xff] %v232_v19 }

// kernel: sweepnet_pcd_forward.2
= control target key start
LH: loop header
LB: loop body
LE: loop exit
PB: predicated region body
PF: predicated region fallthrough
CT: control target
= control target key end

     0   :  { %v1686_v0 = vmov 1   ;;  %v1687_v4 = vmov 0   ;;  %v1688_v5 = vmov 2   ;;  %v2485_v13 = vlaneseq  ;;  %s2467_s1 = inlined_call_operand.vmem [shape: f32[32,3], index: 1, kind: input, shape index: {}]   ;;  %s2468_s2 = inlined_call_operand.vmem [shape: f32[32,1], index: 2, kind: input, shape index: {}]   ;;  %s2469_s0 = inlined_call_operand.vmem [shape: f32[8,3,128], index: 0, kind: input, shape index: {}]   ;;  %s2470_s3 = inlined_call_operand.vmem [shape: bf16[32,64], index: 3, kind: input, shape index: {}]   ;;  %s2471_s5 = inlined_call_operand.vmem [shape: bf16[64,128], index: 5, kind: input, shape index: {}]   ;;  %s2472_s7 = inlined_call_operand.vmem [shape: bf16[128,256], index: 7, kind: input, shape index: {}]   ;;  %s2473_s4 = inlined_call_operand.vmem [shape: f32[1,64], index: 4, kind: input, shape index: {}]   ;;  %s2474_s9 = inlined_call_operand.vmem [shape: bf16[256,128], index: 9, kind: input, shape index: {}]   ;;  %s2475_s11 = inlined_call_operand.vmem [shape: bf16[256,128], index: 11, kind: input, shape index: {}]   ;;  %s2476_s6 = inlined_call_operand.vmem [shape: f32[1,128], index: 6, kind: input, shape index: {}]   ;;  %s2477_s8 = inlined_call_operand.vmem [shape: f32[1,256], index: 8, kind: input, shape index: {}]   ;;  %s2478_s10 = inlined_call_operand.vmem [shape: f32[1,128], index: 10, kind: input, shape index: {}]   ;;  %s2479_s12 = inlined_call_operand.vmem [shape: f32[1,128], index: 12, kind: input, shape index: {}]   ;;  %s2480_s13 = inlined_call_operand.vmem [shape: f32[1,128], index: 13, kind: input, shape index: {}]   ;;  %s2481_s15 = inlined_call_operand.vmem [shape: f32[8,128], index: 15, kind: output, shape index: {0}]   ;;  %s2482_s14 = inlined_call_operand.vmem [shape: f32[1,128], index: 14, kind: input, shape index: {}]   ;;  %s2483_s16 = inlined_call_operand.vmem [shape: f32[8,128], index: 16, kind: output, shape index: {1}]  }
   0x1   :  { %2500 = sst [smem:[#allocation11_spill]] %s2467_s1  ;;  %1610 = vset.pattern.permute.xlu0 %v1686_v0  ;;  %1608 = vset.pattern.permute.xlu1 %v1686_v0  ;;  %v57_v7 = vld [vmem:[%s2468_s2] sm:$0xff]  ;;  %v60_v8 = vld [vmem:[%s2468_s2 + $0x18] sm:$0xff]  ;;  %v58_v9 = vld [vmem:[%s2468_s2 + $0x8] sm:$0xff]  ;;  %vm1690_vm0 = vmmov 0   ;;  %vm611_vm1 = vcmask 130112  }
   0x2   :  { %s2501_s23 = sld [smem:[#allocation11_spill]]  ;;  %1062 = vmatprep.mubr.bf16.mxu0 %v1687_v4  ;;  %v59_v10 = vld [vmem:[%s2468_s2 + $0x10] sm:$0xff]  ;;  %v1809_v16 = vshrl.u32 %v2485_v13, 7  ;;  %v61_v21 = vld [vmem:[%s2469_s0] sm:$0x7]  ;;  %vm618_vm2 = vcmask 195712  }
   0x3   :  { %v62_v27 = vld [vmem:[%s2469_s0 + $0x4] sm:$0x7]  ;;  %v63_v28 = vld [vmem:[%s2469_s0 + $0x8] sm:$0x7]  ;;  %v64_v29 = vld [vmem:[%s2469_s0 + $0xc] sm:$0x7] }
   0x4   :  { %2504 = vst [vmem:[#allocation4_spill] sm:$0xff] %v1809_v16  ;;  %v1812_v17 = vsub.s32 0, %v1809_v16  ;;  %v1819_v20 = vsub.s32 1, %v1809_v16  ;;  %v1833_v26 = vsub.s32 2, %v1809_v16  ;;  %v65_v30 = vld [vmem:[%s2469_s0 + $0x10] sm:$0x7] }
   0x5   :  { %v66_v37 = vld [vmem:[%s2469_s0 + $0x14] sm:$0x7]  ;;  %v68_v43 = vld [vmem:[%s2469_s0 + $0x1c] sm:$0x7]  ;;  %v1905_v53 = vld [vmem:[%s2469_s0 + $0x18] sm:$0x7] }
   0x6   :  { %2505 = vst [vmem:[#allocation5_spill] sm:$0xff] %v1812_v17  ;;  %2506 = vst [vmem:[#allocation6_spill] sm:$0xff] %v1819_v20  ;;  %v1825_v22 = vrot.slane %v61_v21, %v1812_v17  ;;  %v172_v25 = vrot.slane %v61_v21, %v1819_v20  ;;  %v1850_v32 = vrot.slane %v62_v27, %v1812_v17  ;;  %vm625_vm3 = vcmask 261312  }
   0x7   :  { %2507 = vst [vmem:[#allocation7_spill] sm:$0xff] %v1833_v26  ;;  %v176_v33 = vrot.slane %v62_v27, %v1819_v20  ;;  %v1854_v34 = vrot.slane %v63_v28, %v1812_v17  ;;  %v1857_v35 = vrot.slane %v63_v28, %v1819_v20  ;;  %v1860_v36 = vrot.slane %v64_v29, %v1812_v17 }
   0x8   :  { %v55_v1 = vld [vmem:[%s2501_s23 + $0x10] sm:$0xff]  ;;  %v53_v2 = vld [vmem:[%s2501_s23] sm:$0xff]  ;;  %v54_v3 = vld [vmem:[%s2501_s23 + $0x8] sm:$0xff]  ;;  %v1869_v40 = vrot.slane %v61_v21, %v1833_v26  ;;  %v1872_v41 = vrot.slane %v64_v29, %v1819_v20  ;;  %v1875_v42 = vrot.slane %v65_v30, %v1819_v20  ;;  %v1883_v45 = vrot.slane %v62_v27, %v1833_v26  ;;  %2508 = vst [vmem:[#allocation8_spill] sm:$0xff] %v1905_v53 }
   0x9   :  { %162 = vperm.xlu0 %1610, %v55_v1   ;;  %154 = vperm.xlu1 %1608, %v53_v2   ;;  %v56_v6 = vld [vmem:[%s2501_s23 + $0x18] sm:$0xff]  ;;  %v1886_v46 = vrot.slane %v63_v28, %v1833_v26  ;;  %v1889_v47 = vrot.slane %v64_v29, %v1833_v26  ;;  %v1892_v48 = vrot.slane %v65_v30, %v1812_v17  ;;  %vm760_vm4 = vcmask 1041409  }
   0xa   :  { %v1897_v51 = vrot.slane %v65_v30, %v1833_v26  ;;  %v1900_v52 = vrot.slane %v66_v37, %v1819_v20  ;;  %v1908_v54 = vrot.slane %v66_v37, %v1812_v17  ;;  %v1911_v55 = vrot.slane %v66_v37, %v1833_v26 }
   0xb   :  { %v1915_v56 = vrot.slane %v1905_v53, %v1812_v17  ;;  %v1918_v57 = vrot.slane %v68_v43, %v1819_v20  ;;  %v1924_v61 = vrot.slane %v68_v43, %v1812_v17  ;;  %v1927_v62 = vrot.slane %v68_v43, %v1833_v26 }
   0xc   :  { %2509 = vst [vmem:[#allocation9_spill] sm:$0xff] %v1911_v55  ;;  %vm762_vm5 = vcmask 1042434   ;;  %vm764_vm6 = vcmask 1043459   ;;  %vm766_vm7 = vcmask 1044484   ;;  %vm768_vm8 = vcmask 1045509  }
   0xd   :  { %1613 = vset.pattern.permute.xlu0 %v1688_v5  ;;  %158 = vperm.xlu1 %1608, %v54_v3   ;;  %2510 = vst [vmem:[#allocation10_spill] sm:$0xff] %v1915_v56  ;;  %vm770_vm9 = vcmask 1046534   ;;  %vm772_vm10 = vcmask 1047559   ;;  %vm787_vm11 = vcmask 261120   ;;  %vm874_vm13 = vcmask 523264  }
   0xe   :  { %270 = vperm.xlu0 %1613, %v54_v3  }
  0x11   :  { %1609 = vset.pattern.permute.xlu1 %v1687_v4 }
  0x12   :  { %1614 = vset.pattern.permute.xlu0 %v1687_v4  ;;  %86 = vperm.xlu1 %1609, %v56_v6  }
  0x13   :  { %71 = vperm.xlu0 %1614, %v53_v2  }
  0x16   :  { %1611 = vset.pattern.permute.xlu1 %v1686_v0 }
  0x17   :  { %76 = vperm.xlu0 %1614, %v54_v3   ;;  %166 = vperm.xlu1 %1611, %v56_v6  }
  0x1b   :  { %81 = vperm.xlu0 %1614, %v55_v1   ;;  %1612 = vset.pattern.permute.xlu1 %v1688_v5 }
  0x1c   :  { %266 = vperm.xlu1 %1612, %v53_v2  }
  0x1f   :  { %379 = vperm.xlu0 %1614, %v57_v7  }
  0x20   :  { %274 = vperm.xlu1 %1612, %v55_v1  }
  0x23   :  { %394 = vperm.xlu0 %1614, %v60_v8  }
  0x24   :  { %278 = vperm.xlu1 %1612, %v56_v6  }
  0x28   :  { %1615 = vset.pattern.permute.xlu1 %v1687_v4 }
  0x29   :  { %384 = vperm.xlu1 %1615, %v58_v9  }
  0x2d   :  { %389 = vperm.xlu1 %1615, %v59_v10  }
  0x84   :  { %v1800_v11 = vpop.permute.xlu1 %154  ;;  %v1802_v12 = vpop.permute.xlu0 %162 }
  0x85   :  { %2502 = vst [vmem:[#allocation2_spill] sm:$0xff] %v1800_v11  ;;  %2503 = vst [vmem:[#allocation3_spill] sm:$0xff] %v1802_v12  ;;  %v201_v39 = vmul.f32 %v172_v25, %v1800_v11  ;;  %v205_v60 = vmul.f32 %v176_v33, %v1800_v11  ;;  %v203_v2 = vmul.f32 %v172_v25, %v1802_v12 }
  0x86   :  { %v1937_v3 = vmul.f32 %v176_v33, %v1802_v12  ;;  %v209_v6 = vmul.f32 %v1857_v35, %v1800_v11  ;;  %v1946_v7 = vmul.f32 %v1857_v35, %v1802_v12  ;;  %v1953_v21 = vmul.f32 %v1872_v41, %v1800_v11 }
  0x87   :  { %v1961_v30 = vmul.f32 %v1872_v41, %v1802_v12 }
  0x88   :  { %v1804_v14 = vpop.permute.xlu1 %158 }
  0x89   :  { %v1806_v15 = vpop.permute.xlu0 %270  ;;  %v202_v8 = vmul.f32 %v172_v25, %v1804_v14  ;;  %v206_v9 = vmul.f32 %v176_v33, %v1804_v14  ;;  %v214_v13 = vmul.f32 %v1872_v41, %v1804_v14 }
  0x8a   :  { %v314_v28 = vmul.f32 %v1869_v40, %v1806_v15 }
  0x8d   :  { %v1814_v18 = vpop.permute.xlu1 %86 }
  0x8e   :  { %v1816_v19 = vpop.permute.xlu0 %71  ;;  %v124_v43 = vmul.f32 %v1825_v22, %v1814_v18 }
  0x8f   :  { %v121_v31 = vmul.f32 %v1825_v22, %v1816_v19  ;;  %v125_v5 = vmul.f32 %v1850_v32, %v1816_v19  ;;  %v129_v20 = vmul.f32 %v1854_v34, %v1816_v19 }
  0x91   :  { %v233_v49 = vadd.f32 %v201_v39, %v121_v31 }
  0x92   :  { %v1827_v23 = vpop.permute.xlu0 %76  ;;  %v1829_v24 = vpop.permute.xlu1 %166 }
  0x93   :  { %v122_v0 = vmul.f32 %v1825_v22, %v1827_v23  ;;  %v126_v1 = vmul.f32 %v1850_v32, %v1827_v23  ;;  %v204_v10 = vmul.f32 %v172_v25, %v1829_v24  ;;  %v318_v25 = vmul.f32 %v1883_v45, %v1806_v15 }
  0x95   :  { %v234_v37 = vadd.f32 %v202_v8, %v122_v0  ;;  %v238_v39 = vadd.f32 %v206_v9, %v126_v1  ;;  %v236_v0 = vadd.f32 %v204_v10, %v124_v43  ;;  %v208_v1 = vmul.f32 %v176_v33, %v1829_v24 }
  0x96   :  { %v1865_v38 = vpop.permute.xlu0 %81  ;;  %v210_v8 = vmul.f32 %v1857_v35, %v1804_v14 }
  0x97   :  { %v1880_v44 = vpop.permute.xlu1 %266  ;;  %v123_v9 = vmul.f32 %v1825_v22, %v1865_v38  ;;  %v346_v10 = vadd.f32 %v314_v28, %v234_v37  ;;  %v350_v43 = vadd.f32 %v318_v25, %v238_v39  ;;  %v322_v22 = vmul.f32 %v1886_v46, %v1806_v15 }
  0x98   :  { %v313_v50 = vmul.f32 %v1869_v40, %v1880_v44  ;;  %v317_v29 = vmul.f32 %v1883_v45, %v1880_v44  ;;  %v2006_v28 = vmul.f32 %v1875_v42, %v1804_v14  ;;  %v127_v53 = vmul.f32 %v1850_v32, %v1865_v38 }
  0x99   :  { %v235_v26 = vadd.f32 %v203_v2, %v123_v9  ;;  %v212_v2 = vmul.f32 %v1857_v35, %v1829_v24  ;;  %v133_v35 = vmul.f32 %v1860_v36, %v1816_v19 }
  0x9a   :  { %v1920_v58 = vpop.permute.xlu0 %379  ;;  %v345_v59 = vadd.f32 %v313_v50, %v233_v49  ;;  %v237_v49 = vadd.f32 %v205_v60, %v125_v5  ;;  %v1984_v60 = vmul.f32 %v1918_v57, %v1802_v12 }
  0x9b   :  { %v1929_v63 = vpop.permute.xlu1 %274 }
  0x9c   :  { %v397_v4 = vadd.f32 %v1920_v58, %v345_v59  ;;  %v1973_v59 = vmul.f32 %v1875_v42, %v1800_v11  ;;  %v349_v5 = vadd.f32 %v317_v29, %v237_v49  ;;  %v130_v29 = vmul.f32 %v1854_v34, %v1827_v23 }
  0x9d   :  { %v2002_v49 = vmul.f32 %v1889_v47, %v1806_v15  ;;  %v315_v25 = vmul.f32 %v1869_v40, %v1929_v63  ;;  %v319_v9 = vmul.f32 %v1883_v45, %v1929_v63 }
  0x9e   :  { %v429_v27 = vmax.f32 %v397_v4, 0.0  ;;  %v1977_v4 = vmul.f32 %v1918_v57, %v1800_v11  ;;  %v401_v56 = vadd.f32 %v1920_v58, %v349_v5 }
  0x9f   :  { %v1963_v31 = vpop.permute.xlu1 %278  ;;  %v347_v5 = vadd.f32 %v315_v25, %v235_v26  ;;  %v131_v25 = vmul.f32 %v1854_v34, %v1865_v38 }
  0xa0   :  { %461 = vmax.xlane.f32.xlu1 %v429_v27  ;;  %v316_v50 = vmul.f32 %v1869_v40, %v1963_v31  ;;  %v128_v27 = vmul.f32 %v1850_v32, %v1814_v18  ;;  %v320_v17 = vmul.f32 %v1883_v45, %v1963_v31  ;;  %v242_v40 = vadd.f32 %v210_v8, %v130_v29 }
  0xa1   :  { %v2028_v32 = vmul.f32 %v1897_v51, %v1806_v15  ;;  %v239_v8 = vadd.f32 %v1937_v3, %v127_v53  ;;  %v433_v29 = vmax.f32 %v401_v56, 0.0  ;;  %v325_v56 = vmul.f32 %v1889_v47, %v1880_v44 }
  0xa2   :  { %v348_v33 = vadd.f32 %v316_v50, %v236_v0  ;;  %v240_v50 = vadd.f32 %v208_v1, %v128_v27  ;;  %v2012_v0 = vpop.permute.xlu0 %394  ;;  %v132_v1 = vmul.f32 %v1854_v34, %v1814_v18  ;;  %v241_v27 = vadd.f32 %v209_v6, %v129_v20 }
  0xa3   :  { %v2045_v20 = vmul.f32 %v1900_v52, %v1804_v14  ;;  %v351_v53 = vadd.f32 %v319_v9, %v239_v8  ;;  %v135_v9 = vmul.f32 %v1860_v36, %v1865_v38  ;;  %v342_v34 = vmul.f32 %v1927_v62, %v1806_v15 }
  0xa4   :  { %v1994_v16 = vpop.permute.xlu1 %384  ;;  %v244_v45 = vadd.f32 %v212_v2, %v132_v1 }
  0xa5   :  { %v398_v37 = vadd.f32 %v1994_v16, %v346_v10  ;;  %v402_v39 = vadd.f32 %v1994_v16, %v350_v43  ;;  %v400_v10 = vadd.f32 %v2012_v0, %v348_v33  ;;  %v352_v43 = vadd.f32 %v320_v17, %v240_v50 }
  0xa6   :  { %v321_v17 = vmul.f32 %v1886_v46, %v1880_v44  ;;  %v324_v33 = vmul.f32 %v1886_v46, %v1963_v31  ;;  %v230_v50 = vmul.f32 %v1918_v57, %v1804_v14 }
  0xa7   :  { %v430_v55 = vmax.f32 %v398_v37, 0.0  ;;  %v434_v11 = vmax.f32 %v402_v39, 0.0  ;;  %v432_v37 = vmax.f32 %v400_v10, 0.0  ;;  %v404_v26 = vadd.f32 %v2012_v0, %v352_v43 }
  0xa8   :  { %v2020_v12 = vpop.permute.xlu1 %389  ;;  %v134_v39 = vmul.f32 %v1860_v36, %v1827_v23  ;;  %v353_v3 = vadd.f32 %v321_v17, %v241_v27  ;;  %v356_v6 = vadd.f32 %v324_v33, %v244_v45  ;;  %v323_v17 = vmul.f32 %v1886_v46, %v1929_v63 }
  0xa9   :  { %463 = vmax.xlane.f32.xlu0 %v430_v55  ;;  %471 = vmax.xlane.f32.xlu1 %v434_v11  ;;  %v399_v11 = vadd.f32 %v2020_v12, %v347_v5  ;;  %v354_v55 = vadd.f32 %v322_v22, %v242_v40  ;;  %v245_v22 = vadd.f32 %v1953_v21, %v133_v35  ;;  %v436_v43 = vmax.f32 %v404_v26, 0.0 }
  0xaa   :  { %v403_v40 = vadd.f32 %v2020_v12, %v351_v53  ;;  %v246_v2 = vadd.f32 %v214_v13, %v134_v39  ;;  %v216_v5 = vmul.f32 %v1872_v41, %v1829_v24  ;;  %v405_v21 = vadd.f32 %v1920_v58, %v353_v3 }
  0xab   :  { %v431_v10 = vmax.f32 %v399_v11, 0.0  ;;  %v406_v1 = vadd.f32 %v1994_v16, %v354_v55  ;;  %v357_v8 = vadd.f32 %v325_v56, %v245_v22  ;;  %v136_v13 = vmul.f32 %v1860_v36, %v1814_v18 }
  0xac   :  { %v328_v41 = vmul.f32 %v1889_v47, %v1963_v31  ;;  %v137_v27 = vmul.f32 %v1892_v48, %v1816_v19  ;;  %v140_v33 = vmul.f32 %v1892_v48, %v1814_v18  ;;  %v435_v35 = vmax.f32 %v403_v40, 0.0 }
  0xad   :  { %469 = vmax.xlane.f32.xlu0 %v433_v29  ;;  %467 = vmax.xlane.f32.xlu1 %v432_v37  ;;  %v438_v29 = vmax.f32 %v406_v1, 0.0  ;;  %v408_v37 = vadd.f32 %v2012_v0, %v356_v6  ;;  %v243_v11 = vadd.f32 %v1946_v7, %v131_v25  ;;  %v358_v46 = vadd.f32 %v2002_v49, %v246_v2 }
  0xae   :  { %v248_v26 = vadd.f32 %v216_v5, %v136_v13  ;;  %v138_v36 = vmul.f32 %v1892_v48, %v1827_v23  ;;  %v329_v55 = vmul.f32 %v1897_v51, %v1880_v44  ;;  %v437_v45 = vmax.f32 %v405_v21, 0.0 }
  0xaf   :  { %v355_v39 = vadd.f32 %v323_v17, %v243_v11  ;;  %v409_v53 = vadd.f32 %v1920_v58, %v357_v8  ;;  %v247_v3 = vadd.f32 %v1961_v30, %v135_v9  ;;  %v410_v56 = vadd.f32 %v1994_v16, %v358_v46 }
  0xb0   :  { %v360_v7 = vadd.f32 %v328_v41, %v248_v26  ;;  %v327_v49 = vmul.f32 %v1889_v47, %v1929_v63  ;;  %v150_v6 = vmul.f32 %v1924_v61, %v1827_v23  ;;  %v440_v25 = vmax.f32 %v408_v37, 0.0 }
  0xb1   :  { %465 = vmax.xlane.f32.xlu0 %v431_v10  ;;  %475 = vmax.xlane.f32.xlu1 %v436_v43  ;;  %v407_v22 = vadd.f32 %v2020_v12, %v355_v39  ;;  %v149_v10 = vmul.f32 %v1924_v61, %v1816_v19  ;;  %v341_v43 = vmul.f32 %v1927_v62, %v1880_v44  ;;  %v442_v21 = vmax.f32 %v410_v56, 0.0 }
  0xb2   :  { %v250_v30 = vadd.f32 %v2006_v28, %v138_v36  ;;  %v220_v40 = vmul.f32 %v1875_v42, %v1829_v24  ;;  %v332_v47 = vmul.f32 %v1897_v51, %v1963_v31  ;;  %v262_v1 = vadd.f32 %v230_v50, %v150_v6 }
  0xb3   :  { %v261_v2 = vadd.f32 %v1977_v4, %v149_v10  ;;  %v152_v5 = vmul.f32 %v1924_v61, %v1814_v18  ;;  %v232_v9 = vmul.f32 %v1918_v57, %v1829_v24  ;;  %v412_v28 = vadd.f32 %v2012_v0, %v360_v7  ;;  %v2513_v7 = vld [vmem:[#allocation9_spill] sm:$0xff] }
  0xb4   :  { %v2103_v17 = vadd.f32 %v342_v34, %v262_v1  ;;  %v151_v8 = vmul.f32 %v1924_v61, %v1865_v38  ;;  %v439_v13 = vmax.f32 %v407_v22, 0.0  ;;  %v343_v4 = vmul.f32 %v1927_v62, %v1929_v63  ;;  %v2514_v1 = vld [vmem:[#allocation6_spill] sm:$0xff] }
  0xb5   :  { %473 = vmax.xlane.f32.xlu0 %v435_v35  ;;  %479 = vmax.xlane.f32.xlu1 %v438_v29  ;;  %v373_v50 = vadd.f32 %v341_v43, %v261_v2  ;;  %v2107_v41 = vadd.f32 %v232_v9, %v152_v5  ;;  %v359_v35 = vadd.f32 %v327_v49, %v247_v3  ;;  %v441_v46 = vmax.f32 %v409_v53, 0.0  ;;  %v2512_v53 = vld [vmem:[#allocation2_spill] sm:$0xff]  ;;  %v2515_v2 = vld [vmem:[#allocation8_spill] sm:$0xff]  ;;  %v2516_v9 = vld [vmem:[#allocation7_spill] sm:$0xff] }
  0xb6   :  { %v362_v29 = vadd.f32 %v2028_v32, %v250_v30  ;;  %v249_v57 = vadd.f32 %v1973_v59, %v137_v27  ;;  %v263_v37 = vadd.f32 %v1984_v60, %v151_v8  ;;  %v252_v34 = vadd.f32 %v220_v40, %v140_v33  ;;  %v2511_v33 = vld [vmem:[#allocation3_spill] sm:$0xff] }
  0xb7   :  { %v142_v61 = vmul.f32 %v1908_v54, %v1827_v23  ;;  %v2117_v11 = vadd.f32 %v1920_v58, %v373_v50  ;;  %v139_v36 = vmul.f32 %v1892_v48, %v1865_v38  ;;  %v444_v32 = vmax.f32 %v412_v28, 0.0 }
  0xb8   :  { %v361_v26 = vadd.f32 %v329_v55, %v249_v57  ;;  %v411_v59 = vadd.f32 %v2020_v12, %v359_v35  ;;  %v414_v60 = vadd.f32 %v1994_v16, %v362_v29  ;;  %v364_v27 = vadd.f32 %v332_v47, %v252_v34 }
  0xb9   :  { %477 = vmax.xlane.f32.xlu0 %v437_v45  ;;  %483 = vmax.xlane.f32.xlu1 %v440_v25  ;;  %v2121_v45 = vadd.f32 %v343_v4, %v263_v37  ;;  %v219_v39 = vmul.f32 %v1875_v42, %v2511_v33  ;;  %v331_v3 = vmul.f32 %v1897_v51, %v1929_v63 }
  0xba   :  { %v141_v55 = vmul.f32 %v1908_v54, %v1816_v19  ;;  %v221_v48 = vmul.f32 %v1900_v52, %v2512_v53  ;;  %v254_v56 = vadd.f32 %v2045_v20, %v142_v61  ;;  %v334_v49 = vmul.f32 %v2513_v7, %v1806_v15 }
  0xbb   :  { %v224_v6 = vmul.f32 %v1900_v52, %v1829_v24  ;;  %v413_v42 = vadd.f32 %v1920_v58, %v361_v26  ;;  %v251_v25 = vadd.f32 %v219_v39, %v139_v36  ;;  %v333_v51 = vmul.f32 %v2513_v7, %v1880_v44 }
  0xbc   :  { %v144_v22 = vmul.f32 %v1908_v54, %v1814_v18  ;;  %v443_v10 = vmax.f32 %v411_v59, 0.0  ;;  %v446_v43 = vmax.f32 %v414_v60, 0.0  ;;  %v416_v30 = vadd.f32 %v2012_v0, %v364_v27 }
  0xbd   :  { %481 = vmax.xlane.f32.xlu0 %v439_v13  ;;  %487 = vmax.xlane.f32.xlu1 %v442_v21  ;;  %v336_v20 = vmul.f32 %v2513_v7, %v1963_v31  ;;  %v363_v40 = vadd.f32 %v331_v3, %v251_v25  ;;  %v253_v47 = vadd.f32 %v221_v48, %v141_v55  ;;  %v2517_v13 = vld [vmem:[#allocation10_spill] sm:$0xff]  ;;  %v445_v4 = vmax.f32 %v413_v42, 0.0 }
  0xbe   :  { %v196_v5 = vrot.slane %v2515_v2, %v2514_v1  ;;  %v308_v21 = vrot.slane %v2515_v2, %v2516_v9  ;;  %v366_v28 = vadd.f32 %v334_v49, %v254_v56  ;;  %v256_v8 = vadd.f32 %v224_v6, %v144_v22 }
  0xbf   :  { %v146_v50 = vmul.f32 %v2517_v13, %v1827_v23  ;;  %v365_v35 = vadd.f32 %v333_v51, %v253_v47  ;;  %v143_v29 = vmul.f32 %v1908_v54, %v1865_v38  ;;  %v448_v37 = vmax.f32 %v416_v30, 0.0 }
  0xc0   :  { %v226_v57 = vmul.f32 %v196_v5, %v1804_v14  ;;  %v415_v34 = vadd.f32 %v2020_v12, %v363_v40  ;;  %v418_v61 = vadd.f32 %v1994_v16, %v366_v28  ;;  %v223_v26 = vmul.f32 %v1900_v52, %v2511_v33 }
  0xc1   :  { %485 = vmax.xlane.f32.xlu0 %v441_v46  ;;  %491 = vmax.xlane.f32.xlu1 %v444_v32  ;;  %v368_v46 = vadd.f32 %v336_v20, %v256_v8  ;;  %v335_v36 = vmul.f32 %v2513_v7, %v1929_v63  ;;  %v145_v23 = vmul.f32 %v2517_v13, %v1816_v19 }
  0xc2   :  { %v225_v32 = vmul.f32 %v196_v5, %v2512_v53  ;;  %v258_v14 = vadd.f32 %v226_v57, %v146_v50  ;;  %v338_v54 = vmul.f32 %v308_v21, %v1806_v15  ;;  %v228_v59 = vmul.f32 %v196_v5, %v1829_v24 }
  0xc3   :  { %v417_v60 = vadd.f32 %v1920_v58, %v365_v35  ;;  %v255_v27 = vadd.f32 %v223_v26, %v143_v29  ;;  %v337_v52 = vmul.f32 %v308_v21, %v1880_v44  ;;  %v148_v39 = vmul.f32 %v2517_v13, %v1814_v18 }
  0xc4   :  { %v447_v3 = vmax.f32 %v415_v34, 0.0  ;;  %v450_v55 = vmax.f32 %v418_v61, 0.0  ;;  %v420_v19 = vadd.f32 %v2012_v0, %v368_v46  ;;  %v340_v53 = vmul.f32 %v308_v21, %v1963_v31 }
  0xc5   :  { %489 = vmax.xlane.f32.xlu0 %v443_v10  ;;  %495 = vmax.xlane.f32.xlu1 %v446_v43  ;;  %v367_v48 = vadd.f32 %v335_v36, %v255_v27  ;;  %v257_v56 = vadd.f32 %v225_v32, %v145_v23  ;;  %v370_v15 = vadd.f32 %v338_v54, %v258_v14  ;;  %v449_v7 = vmax.f32 %v417_v60, 0.0 }
  0xc6   :  { %v260_v24 = vadd.f32 %v228_v59, %v148_v39  ;;  %v452_v44 = vmax.f32 %v420_v19, 0.0  ;;  %v147_v25 = vmul.f32 %v2517_v13, %v1865_v38  ;;  %v227_v51 = vmul.f32 %v196_v5, %v2511_v33 }
  0xc7   :  { %v419_v49 = vadd.f32 %v2020_v12, %v367_v48  ;;  %v369_v6 = vadd.f32 %v337_v52, %v257_v56  ;;  %v422_v42 = vadd.f32 %v1994_v16, %v370_v15  ;;  %v339_v22 = vmul.f32 %v308_v21, %v1929_v63 }
  0xc8   :  { %v372_v18 = vadd.f32 %v340_v53, %v260_v24  ;;  %v259_v40 = vadd.f32 %v227_v51, %v147_v25  ;;  %v344_v47 = vmul.f32 %v1927_v62, %v1963_v31  ;;  %v426_v63 = vadd.f32 %v1994_v16, %v2103_v17  ;;  %v1616_v17 = vld [vmem:[%s2470_s3 + $0x8] sm:$0xff]  }
  0xc9   :  { %493 = vmax.xlane.f32.xlu0 %v445_v4  ;;  %499 = vmax.xlane.f32.xlu1 %v448_v37  ;;  %v451_v10 = vmax.f32 %v419_v49, 0.0  ;;  %v421_v43 = vadd.f32 %v1920_v58, %v369_v6  ;;  %v454_v30 = vmax.f32 %v422_v42, 0.0  ;;  %v457_v62 = vmax.f32 %v2117_v11, 0.0 }
  0xca   :  { %v424_v20 = vadd.f32 %v2012_v0, %v372_v18  ;;  %v371_v2 = vadd.f32 %v339_v22, %v259_v40  ;;  %v376_v33 = vadd.f32 %v344_v47, %v2107_v41  ;;  %v458_v5 = vmax.f32 %v426_v63, 0.0 }
  0xcb   :  { %v453_v38 = vmax.f32 %v421_v43, 0.0  ;;  %v427_v8 = vadd.f32 %v2020_v12, %v2121_v45  ;;  %v1689_v16 = vmov 0.0   ;;  %v2518_v23 = vlaneseq }
  0xcc   :  { %v456_v9 = vmax.f32 %v424_v20, 0.0  ;;  %v423_v28 = vadd.f32 %v2020_v12, %v371_v2  ;;  %v428_v21 = vadd.f32 %v2012_v0, %v376_v33  ;;  %1583 = vmatprep.subr.bf16.mxu1 %v1689_v16  ;;  %1587 = vmatprep.mubr.msk.bf16.mxu1 %vm1690_vm0, %v1689_v16  ;;  %v1617_v12 = vld [vmem:[%s2470_s3] sm:$0xff]  }
  0xcd   :  { %497 = vmax.xlane.f32.xlu0 %v447_v3  ;;  %503 = vmax.xlane.f32.xlu1 %v450_v55  ;;  %v459_v13 = vmax.f32 %v427_v8, 0.0  ;;  %v601_v32 = vand.u32 127, %v2518_v23  ;;  %v2519_v55 = vld [vmem:[#allocation4_spill] sm:$0xff] }
  0xce   :  { %v455_v58 = vmax.f32 %v423_v28, 0.0  ;;  %v460_v31 = vmax.f32 %v428_v21, 0.0  ;;  %1584 = vmatpush3.bf16.msra.mxu1 %v1616_v17 }
  0xcf   :  { %1585 = vmatprep.subr.bf16.mxu1 %v1689_v16  ;;  %v606_v59 = vadd.s32 4294967288, %v601_v32  ;;  %v613_v39 = vadd.s32 4294967280, %v601_v32  ;;  %v2203_v19 = vsub.s32 %v601_v32, %v2519_v55  ;;  %v620_v6 = vadd.s32 4294967272, %v601_v32 }
  0xd1   :  { %501 = vmax.xlane.f32.xlu0 %v449_v7  ;;  %507 = vmax.xlane.f32.xlu1 %v452_v44  ;;  %v2206_v53 = vsub.s32 %v606_v59, %v2519_v55  ;;  %v2209_v49 = vsub.s32 %v613_v39, %v2519_v55  ;;  %v2214_v20 = vsub.s32 %v620_v6, %v2519_v55 }
  0xd2   :  { %1586 = vmatpush3.bf16.msra.mxu1 %v1617_v12 }
  0xd3   :  { %1591 = vmatprep.subr.bf16.mxu1 %v1689_v16 }
  0xd5   :  { %505 = vmax.xlane.f32.xlu0 %v451_v10  ;;  %511 = vmax.xlane.f32.xlu1 %v454_v30 }
  0xd9   :  { %509 = vmax.xlane.f32.xlu0 %v453_v38  ;;  %515 = vmax.xlane.f32.xlu1 %v456_v9 }
  0xdd   :  { %513 = vmax.xlane.f32.xlu0 %v455_v58  ;;  %519 = vmax.xlane.f32.xlu1 %v458_v5 }
  0xe1   :  { %517 = vmax.xlane.f32.xlu0 %v457_v62  ;;  %523 = vmax.xlane.f32.xlu1 %v460_v31 }
  0xe5   :  { %521 = vmax.xlane.f32.xlu0 %v459_v13 }
 0x129   :  { %v462_v0 = vpop.xlane.xlu1 %461 }
 0x132   :  { %v464_v41 = vpop.xlane.xlu0 %463  ;;  %v472_v11 = vpop.xlane.xlu1 %471 }
 0x133   :  { %v525_v60 = vpack.c.bf16 %v464_v41, %v462_v0 }
 0x135   :  { %v568_v48 = vunpack.c.l.b16 %v525_v60  ;;  %v569_v56 = vunpack.c.h.b16 %v525_v60 }
 0x136   :  { %v470_v45 = vpop.xlane.xlu0 %469  ;;  %v468_v50 = vpop.xlane.xlu1 %467 }
 0x137   :  { %v527_v15 = vpack.c.bf16 %v472_v11, %v470_v45  ;;  %v605_v25 = vrot.slane %v568_v48, %v2203_v19  ;;  %v610_v51 = vrot.slane %v569_v56, %v2206_v53 }
 0x139   :  { %v572_v22 = vunpack.c.l.b16 %v527_v15  ;;  %v573_v10 = vunpack.c.h.b16 %v527_v15  ;;  %v612_v33 = vsel %vm611_vm1, %v610_v51, %v605_v25 }
 0x13a   :  { %v466_v4 = vpop.xlane.xlu0 %465  ;;  %v476_v35 = vpop.xlane.xlu1 %475 }
 0x13b   :  { %v526_v3 = vpack.c.bf16 %v468_v50, %v466_v4  ;;  %v630_v58 = vrot.slane %v572_v22, %v2203_v19  ;;  %v634_v5 = vrot.slane %v573_v10, %v2206_v53 }
 0x13d   :  { %v570_v44 = vunpack.c.l.b16 %v526_v3  ;;  %v571_v40 = vunpack.c.h.b16 %v526_v3 }
 0x13e   :  { %v474_v29 = vpop.xlane.xlu0 %473  ;;  %v480_v57 = vpop.xlane.xlu1 %479 }
 0x13f   :  { %v528_v42 = vpack.c.bf16 %v476_v35, %v474_v29  ;;  %v617_v47 = vrot.slane %v570_v44, %v2209_v49  ;;  %v624_v8 = vrot.slane %v571_v40, %v2214_v20  ;;  %v635_v29 = vsel %vm611_vm1, %v634_v5, %v630_v58 }
 0x141   :  { %v574_v9 = vunpack.c.l.b16 %v528_v42  ;;  %v619_v31 = vsel %vm618_vm2, %v617_v47, %v612_v33  ;;  %v575_v13 = vunpack.c.h.b16 %v528_v42 }
 0x142   :  { %v478_v37 = vpop.xlane.xlu0 %477  ;;  %v484_v34 = vpop.xlane.xlu1 %483 }
 0x143   :  { %v529_v18 = vpack.c.bf16 %v480_v57, %v478_v37  ;;  %v639_v45 = vrot.slane %v574_v9, %v2209_v49 }
 0x145   :  { %v576_v28 = vunpack.c.l.b16 %v529_v18  ;;  %v577_v63 = vunpack.c.h.b16 %v529_v18 }
 0x146   :  { %v482_v61 = vpop.xlane.xlu0 %481  ;;  %v488_v46 = vpop.xlane.xlu1 %487 }
 0x147   :  { %v530_v2 = vpack.c.bf16 %v484_v34, %v482_v61  ;;  %v649_v50 = vrot.slane %v576_v28, %v2203_v19  ;;  %v653_v4 = vrot.slane %v577_v63, %v2206_v53 }
 0x149   :  { %v578_v17 = vunpack.c.l.b16 %v530_v2  ;;  %v579_v57 = vunpack.c.h.b16 %v530_v2 }
 0x14a   :  { %v486_v26 = vpop.xlane.xlu0 %485  ;;  %v492_v36 = vpop.xlane.xlu1 %491 }
 0x14b   :  { %v531_v38 = vpack.c.bf16 %v488_v46, %v486_v26  ;;  %v2227_v26 = vsel %vm625_vm3, %v624_v8, %v619_v31  ;;  %v658_v23 = vrot.slane %v578_v17, %v2209_v49  ;;  %v663_v55 = vrot.slane %v579_v57, %v2214_v20 }
 0x14d   :  { %v580_v12 = vunpack.c.l.b16 %v531_v38  ;;  %v581_v0 = vunpack.c.h.b16 %v531_v38 }
 0x14e   :  { %v490_v14 = vpop.xlane.xlu0 %489  ;;  %v496_v54 = vpop.xlane.xlu1 %495 }
 0x14f   :  { %v532_v41 = vpack.c.bf16 %v492_v36, %v490_v14  ;;  %v644_v36 = vrot.slane %v575_v13, %v2214_v20  ;;  %v668_v14 = vrot.slane %v580_v12, %v2203_v19 }
 0x151   :  { %v582_v59 = vunpack.c.l.b16 %v532_v41  ;;  %v583_v25 = vunpack.c.h.b16 %v532_v41 }
 0x152   :  { %v494_v27 = vpop.xlane.xlu0 %493  ;;  %v500_v52 = vpop.xlane.xlu1 %499 }
 0x153   :  { %v533_v11 = vpack.c.bf16 %v496_v54, %v494_v27  ;;  %v672_v54 = vrot.slane %v581_v0, %v2206_v53  ;;  %v640_v27 = vsel %vm618_vm2, %v639_v45, %v635_v29  ;;  %v677_v51 = vrot.slane %v582_v59, %v2209_v49 }
 0x154   :  { %v682_v8 = vrot.slane %v583_v25, %v2214_v20  ;;  %v1624_v25 = vld [vmem:[%s2472_s7 + $0x70] ss:$8 sps:$4 sm:$0xff]  }
 0x155   :  { %v584_v60 = vunpack.c.l.b16 %v533_v11  ;;  %v585_v39 = vunpack.c.h.b16 %v533_v11  ;;  %v673_v18 = vsel %vm611_vm1, %v672_v54, %v668_v14 }
 0x156   :  { %v498_v24 = vpop.xlane.xlu0 %497  ;;  %v504_v7 = vpop.xlane.xlu1 %503  ;;  %v678_v31 = vsel %vm618_vm2, %v677_v51, %v673_v18  ;;  %v1622_v18 = vld [vmem:[%s2472_s7 + $0x74] ss:$8 sps:$4 sm:$0xff]   ;;  %v1625_v51 = vld [vmem:[%s2472_s7 + $0x64] ss:$8 sps:$4 sm:$0xff]  }
 0x157   :  { %v534_v35 = vpack.c.bf16 %v500_v52, %v498_v24  ;;  %v654_v52 = vsel %vm611_vm1, %v653_v4, %v649_v50  ;;  %v687_v22 = vrot.slane %v584_v60, %v2203_v19  ;;  %1030 = vmatprep.subr.bf16.mxu0 %v1622_v18  ;;  %v1675_v18 = vld [vmem:[%s2475_s11 + $0x40] sm:$0xff]  }
 0x158   :  { %1031 = vmatpush1.bf16.msra.mxu0 %v1624_v25  ;;  %v1676_v25 = vld [vmem:[%s2474_s9] sm:$0xff]  }
 0x159   :  { %v586_v3 = vunpack.c.l.b16 %v534_v35  ;;  %1032 = vmatprep.subr.bf16.mxu0 %v1625_v51  ;;  %v1677_v51 = vld [vmem:[%s2475_s11] sm:$0xff]  }
 0x15a   :  { %v502_v43 = vpop.xlane.xlu0 %501  ;;  %v508_v30 = vpop.xlane.xlu1 %507 }
 0x15b   :  { %v535_v37 = vpack.c.bf16 %v504_v7, %v502_v43  ;;  %v659_v7 = vsel %vm618_vm2, %v658_v23, %v654_v52  ;;  %v691_v43 = vrot.slane %v585_v39, %v2206_v53  ;;  %v696_v40 = vrot.slane %v586_v3, %v2209_v49 }
 0x15c   :  { %v664_v11 = vsel %vm625_vm3, %v663_v55, %v659_v7 }
 0x15d   :  { %v588_v48 = vunpack.c.l.b16 %v535_v37  ;;  %v589_v56 = vunpack.c.h.b16 %v535_v37  ;;  %v692_v17 = vsel %vm611_vm1, %v691_v43, %v687_v22  ;;  %v1627_v22 = vld [vmem:[%s2472_s7 + $0x60] ss:$8 sps:$4 sm:$0xff]   ;;  %v1631_v43 = vld [vmem:[%s2472_s7 + $0x44] ss:$8 sps:$4 sm:$0xff]  }
 0x15e   :  { %v506_v21 = vpop.xlane.xlu0 %505  ;;  %v512_v62 = vpop.xlane.xlu1 %511  ;;  %v697_v45 = vsel %vm618_vm2, %v696_v40, %v692_v17  ;;  %1033 = vmatpush1.bf16.msra.mxu0 %v1627_v22  ;;  %v1634_v40 = vld [vmem:[%s2472_s7 + $0x34] ss:$8 sps:$4 sm:$0xff]   ;;  %v1643_v17 = vld [vmem:[%s2472_s7 + $0x4] ss:$8 sps:$4 sm:$0xff]   ;;  %v938_v22 = vld [vmem:[%s2477_s8] sm:$0x3] }
 0x15f   :  { %v536_v34 = vpack.c.bf16 %v508_v30, %v506_v21  ;;  %v587_v30 = vunpack.c.h.b16 %v534_v35  ;;  %v706_v2 = vrot.slane %v588_v48, %v2203_v19  ;;  %v710_v38 = vrot.slane %v589_v56, %v2206_v53 }
 0x161   :  { %v590_v15 = vunpack.c.l.b16 %v536_v34  ;;  %v591_v9 = vunpack.c.h.b16 %v536_v34  ;;  %v701_v12 = vrot.slane %v587_v30, %v2214_v20  ;;  %v711_v50 = vsel %vm611_vm1, %v710_v38, %v706_v2  ;;  %v1633_v30 = vld [vmem:[%s2472_s7 + $0x40] ss:$8 sps:$4 sm:$0xff]   ;;  %v1637_v2 = vld [vmem:[%s2472_s7 + $0x24] ss:$8 sps:$4 sm:$0xff]  }
 0x162   :  { %v510_v61 = vpop.xlane.xlu0 %509  ;;  %v516_v46 = vpop.xlane.xlu1 %515  ;;  %v1639_v38 = vld [vmem:[%s2472_s7 + $0x20] ss:$8 sps:$4 sm:$0xff]  }
 0x163   :  { %v537_v32 = vpack.c.bf16 %v512_v62, %v510_v61  ;;  %v715_v28 = vrot.slane %v590_v15, %v2209_v49  ;;  %v645_v62 = vsel %vm625_vm3, %v644_v36, %v640_v27  ;;  %v720_v4 = vrot.slane %v591_v9, %v2214_v20  ;;  %v1467_v9 = vld [vmem:[%s2473_s4] ss:$0 sm:$0xff] }
 0x164   :  { %v761_v14 = vsel %vm760_vm4, %v645_v62, %v2227_v26  ;;  %v702_v54 = vsel %vm625_vm3, %v701_v12, %v697_v45  ;;  %v1645_v12 = vld [vmem:[%s2472_s7] ss:$8 sps:$4 sm:$0xff]   ;;  %v1650_v45 = vld [vmem:[%s2474_s9 + $0x70] sm:$0xff]  }
 0x165   :  { %v592_v6 = vunpack.c.l.b16 %v537_v32  ;;  %v593_v44 = vunpack.c.h.b16 %v537_v32  ;;  %v716_v57 = vsel %vm618_vm2, %v715_v28, %v711_v50  ;;  %v763_v27 = vsel %vm762_vm5, %v664_v11, %v761_v14  ;;  %v1648_v11 = vld [vmem:[%s2474_s9 + $0x38] sm:$0xff]   ;;  %v1652_v50 = vld [vmem:[%s2474_s9 + $0x30] sm:$0xff]  }
 0x166   :  { %v514_v24 = vpop.xlane.xlu0 %513  ;;  %v520_v10 = vpop.xlane.xlu1 %519  ;;  %v721_v52 = vsel %vm625_vm3, %v720_v4, %v716_v57  ;;  %v1654_v4 = vld [vmem:[%s2474_s9 + $0x68] sm:$0xff]   ;;  %v1660_v57 = vld [vmem:[%s2474_s9 + $0x20] sm:$0xff]  }
 0x167   :  { %v538_v42 = vpack.c.bf16 %v516_v46, %v514_v24  ;;  %v725_v33 = vrot.slane %v592_v6, %v2203_v19  ;;  %v729_v58 = vrot.slane %v593_v44, %v2206_v53  ;;  %v683_v46 = vsel %vm625_vm3, %v682_v8, %v678_v31  ;;  %v1618_v6 = vld [vmem:[%s2471_s5 + $0x18] sm:$0xff]   ;;  %v1620_v44 = vld [vmem:[%s2471_s5 + $0x8] sm:$0xff]  }
 0x168   :  { %v765_v39 = vsel %vm764_vm6, %v683_v46, %v763_v27  ;;  %v1640_v8 = vld [vmem:[%s2472_s7 + $0x14] ss:$8 sps:$4 sm:$0xff]   ;;  %v1471_v46 = vld [vmem:[%s2476_s6] ss:$0 sm:$0xff] }
 0x169   :  { %v594_v47 = vunpack.c.l.b16 %v538_v42  ;;  %v595_v5 = vunpack.c.h.b16 %v538_v42  ;;  %v730_v37 = vsel %vm611_vm1, %v729_v58, %v725_v33  ;;  %v767_v26 = vsel %vm766_vm7, %v702_v54, %v765_v39  ;;  %v1621_v42 = vld [vmem:[%s2471_s5] sm:$0xff]   ;;  %v1651_v39 = vld [vmem:[%s2475_s11 + $0x70] sm:$0xff]  }
 0x16a   :  { %v518_v63 = vpop.xlane.xlu0 %517  ;;  %v524_v35 = vpop.xlane.xlu1 %523  ;;  %v769_v48 = vsel %vm768_vm8, %v721_v52, %v767_v26  ;;  %v1659_v26 = vld [vmem:[%s2475_s11 + $0x60] sm:$0xff]  }
 0x16b   :  { %v539_v21 = vpack.c.bf16 %v520_v10, %v518_v63  ;;  %v734_v13 = vrot.slane %v594_v47, %v2209_v49  ;;  %v739_v34 = vrot.slane %v595_v5, %v2214_v20  ;;  %v1630_v10 = vld [vmem:[%s2472_s7 + $0x50] ss:$8 sps:$4 sm:$0xff]  }
 0x16c   :  { %v1636_v47 = vld [vmem:[%s2472_s7 + $0x30] ss:$8 sps:$4 sm:$0xff]  }
 0x16d   :  { %v596_v0 = vunpack.c.l.b16 %v539_v21  ;;  %v597_v41 = vunpack.c.h.b16 %v539_v21  ;;  %v735_v36 = vsel %vm618_vm2, %v734_v13, %v730_v37  ;;  %v1642_v13 = vld [vmem:[%s2472_s7 + $0x10] ss:$8 sps:$4 sm:$0xff]  }
 0x16e   :  { %v522_v29 = vpop.xlane.xlu0 %521  ;;  %v740_v3 = vsel %vm625_vm3, %v739_v34, %v735_v36  ;;  %v1662_v37 = vld [vmem:[%s2474_s9 + $0x58] sm:$0xff]  }
 0x16f   :  { %v540_v61 = vpack.c.bf16 %v524_v35, %v522_v29  ;;  %v744_v23 = vrot.slane %v596_v0, %v2203_v19  ;;  %v748_v32 = vrot.slane %v597_v41, %v2206_v53  ;;  %v771_v24 = vsel %vm770_vm9, %v740_v3, %v769_v48  ;;  %v1646_v0 = vld [vmem:[%s2474_s9 + $0x78] sm:$0xff]   ;;  %v1656_v35 = vld [vmem:[%s2474_s9 + $0x28] sm:$0xff]   ;;  %v1658_v29 = vld [vmem:[%s2474_s9 + $0x60] sm:$0xff]  }
 0x170   :  { %v1647_v41 = vld [vmem:[%s2475_s11 + $0x78] sm:$0xff]   ;;  %v1653_v3 = vld [vmem:[%s2475_s11 + $0x30] sm:$0xff]  }
 0x171   :  { %v598_v59 = vunpack.c.l.b16 %v540_v61  ;;  %v599_v60 = vunpack.c.h.b16 %v540_v61  ;;  %v749_v55 = vsel %vm611_vm1, %v748_v32, %v744_v23  ;;  %v1664_v34 = vld [vmem:[%s2474_s9 + $0x18] sm:$0xff]   ;;  %v1666_v61 = vld [vmem:[%s2474_s9 + $0x50] sm:$0xff]  }
 0x172   :  { %v1663_v48 = vld [vmem:[%s2475_s11 + $0x58] sm:$0xff]  }
 0x173   :  { %v753_v19 = vrot.slane %v598_v59, %v2209_v49  ;;  %v758_v53 = vrot.slane %v599_v60, %v2214_v20  ;;  %v1619_v20 = vld [vmem:[%s2471_s5 + $0x10] sm:$0xff]   ;;  %v1649_v60 = vld [vmem:[%s2475_s11 + $0x38] sm:$0xff]  }
 0x175   :  { %v754_v56 = vsel %vm618_vm2, %v753_v19, %v749_v55  ;;  %v1655_v19 = vld [vmem:[%s2475_s11 + $0x68] sm:$0xff]   ;;  %v1661_v55 = vld [vmem:[%s2475_s11 + $0x20] sm:$0xff]  }
 0x176   :  { %v759_v15 = vsel %vm625_vm3, %v758_v53, %v754_v56  ;;  %v1657_v53 = vld [vmem:[%s2475_s11 + $0x28] sm:$0xff]   ;;  %v1665_v56 = vld [vmem:[%s2475_s11 + $0x18] sm:$0xff]  }
 0x177   :  { %v773_v7 = vsel %vm772_vm10, %v759_v15, %v771_v24  ;;  %v1667_v15 = vld [vmem:[%s2475_s11 + $0x50] sm:$0xff]  }
 0x178   :  { %v774_v49 = vpack.c.b16 %v773_v7, %v773_v7  ;;  %v1668_v24 = vld [vmem:[%s2474_s9 + $0x10] sm:$0xff]  }
 0x179   :  { %v1669_v7 = vld [vmem:[%s2475_s11 + $0x10] sm:$0xff]  }
 0x17a   :  { %1588 = vmatmul.mubr.msk.bf16.vlgmr.msra.gmra.mxu1 %vm787_vm11, %v774_v49  ;;  %v1671_v49 = vld [vmem:[%s2475_s11 + $0x48] sm:$0xff]  }
 0x17b   :  { %1592 = vmatpush3.bf16.msra.mxu1 %v1618_v6  ;;  %1599 = vmatprep.mubr.msk.bf16.mxu1 %vm1690_vm0, %v1689_v16  ;;  %v1670_v6 = vld [vmem:[%s2474_s9 + $0x48] sm:$0xff]  }
 0x17c   :  { %1593 = vmatprep.subr.bf16.mxu1 %v1689_v16 }
 0x17f   :  { %1594 = vmatpush3.bf16.msra.mxu1 %v1619_v20  ;;  %v1672_v20 = vld [vmem:[%s2474_s9 + $0x8] sm:$0xff]  }
 0x180   :  { %1595 = vmatprep.subr.bf16.mxu1 %v1689_v16 }
 0x183   :  { %1596 = vmatpush3.bf16.msra.mxu1 %v1620_v44  ;;  %v1673_v44 = vld [vmem:[%s2475_s11 + $0x8] sm:$0xff]  }
 0x184   :  { %1597 = vmatprep.subr.bf16.mxu1 %v1689_v16  ;;  %v1628_v16 = vld [vmem:[%s2472_s7 + $0x54] ss:$8 sps:$4 sm:$0xff]  }
 0x185   :  { %1034 = vmatprep.subr.bf16.mxu0 %v1628_v16  ;;  %v2520_v16 = vld [vmem:[#allocation5_spill] sm:$0xff] }
 0x186   :  { %1035 = vmatpush1.bf16.msra.mxu0 %v1630_v10  ;;  %v943_v10 = vrot.slane %v938_v22, %v2520_v16 }
 0x187   :  { %1598 = vmatpush3.bf16.msra.mxu1 %v1621_v42  ;;  %1036 = vmatprep.subr.bf16.mxu0 %v1631_v43  ;;  %v1674_v42 = vld [vmem:[%s2474_s9 + $0x40] sm:$0xff]   ;;  %v947_v43 = vrot.slane %v938_v22, %v2514_v1 }
 0x188   :  { %1539 = vmatprep.subr.bf16.mxu1 %v1646_v0 }
 0x18a   :  { %1037 = vmatpush1.bf16.msra.mxu0 %v1633_v30 }
 0x18b   :  { %1038 = vmatprep.subr.bf16.mxu0 %v1634_v40 }
 0x18e   :  { %1039 = vmatpush1.bf16.msra.mxu0 %v1636_v47 }
 0x18f   :  { %1040 = vmatprep.subr.bf16.mxu0 %v1637_v2 }
 0x192   :  { %1041 = vmatpush1.bf16.msra.mxu0 %v1639_v38 }
 0x193   :  { %1042 = vmatprep.subr.bf16.mxu0 %v1640_v8 }
 0x196   :  { %1043 = vmatpush1.bf16.msra.mxu0 %v1642_v13  ;;  %v1511_v13 = vld [vmem:[%s2479_s12] ss:$0 sm:$0xff] }
 0x197   :  { %1044 = vmatprep.subr.bf16.mxu0 %v1643_v17 }
 0x19a   :  { %1045 = vmatpush1.bf16.msra.mxu0 %v1645_v12 }
 0x19b   :  { %1561 = vmatprep.subr.bf16.mxu0 %v1647_v41 }
 0x23a   :  { %v825_v28 = vpop.f32.mrf.mxu1 }
 0x23b   :  { %v826_v63 = vadd.f32 %v1467_v9, %v825_v28 }
 0x23c   :  { %v1589_v33 = vpop.f32.mrf.mxu1 }
 0x23d   :  { %vm831_vm12 = vcmp.ge.f32.partialorder %v826_v63, 0.0  ;;  %v832_v58 = vmul.f32 0.01, %v826_v63 }
 0x23e   :  { %v828_v5 = vpop.f32.mrf.mxu1 }
 0x23f   :  { %v833_v21 = vsel %vm831_vm12, %v826_v63, %v832_v58 }
 0x240   :  { %v834_v62 = vpack.c.bf16 %v833_v21, %v833_v21  ;;  %v1590_v31 = vpop.f32.mrf.mxu1 }
 0x241   :  { %v1493_v31 = vld [vmem:[%s2478_s10] ss:$0 sm:$0xff] }
 0x242   :  { %1600 = vmatmul.mubr.msk.bf16.vlgmr.msra.gmra.mxu1 %vm874_vm13, %v834_v62 }
 0x243   :  { %1540 = vmatpush3.bf16.msra.mxu1 %v1648_v11 }
 0x244   :  { %1541 = vmatprep.subr.bf16.mxu1 %v1650_v45 }
 0x247   :  { %1542 = vmatpush3.bf16.msra.mxu1 %v1652_v50 }
 0x248   :  { %1543 = vmatprep.subr.bf16.mxu1 %v1654_v4 }
 0x24b   :  { %1544 = vmatpush3.bf16.msra.mxu1 %v1656_v35 }
 0x24c   :  { %1545 = vmatprep.subr.bf16.mxu1 %v1658_v29 }
 0x24f   :  { %1546 = vmatpush3.bf16.msra.mxu1 %v1660_v57 }
 0x250   :  { %1547 = vmatprep.subr.bf16.mxu1 %v1662_v37 }
 0x253   :  { %1548 = vmatpush3.bf16.msra.mxu1 %v1664_v34 }
 0x254   :  { %1549 = vmatprep.subr.bf16.mxu1 %v1666_v61 }
 0x257   :  { %1550 = vmatpush3.bf16.msra.mxu1 %v1668_v24 }
 0x258   :  { %1551 = vmatprep.subr.bf16.mxu1 %v1670_v6 }
 0x25b   :  { %1552 = vmatpush3.bf16.msra.mxu1 %v1672_v20 }
 0x25c   :  { %1553 = vmatprep.subr.bf16.mxu1 %v1674_v42 }
 0x25f   :  { %1554 = vmatpush3.bf16.msra.mxu1 %v1676_v25 }
 0x302   :  { %v912_v36 = vpop.f32.mrf.mxu1 }
 0x303   :  { %v913_v23 = vadd.f32 %v1471_v46, %v912_v36  ;;  %v1529_v36 = vld [vmem:[%s2480_s13] ss:$0 sm:$0xff] }
 0x304   :  { %v1601_v32 = vpop.f32.mrf.mxu1 }
 0x305   :  { %vm918_vm14 = vcmp.ge.f32.partialorder %v913_v23, 0.0  ;;  %v919_v14 = vmul.f32 0.01, %v913_v23 }
 0x306   :  { %v915_v54 = vpop.f32.mrf.mxu1 }
 0x307   :  { %v920_v59 = vsel %vm918_vm14, %v913_v23, %v919_v14  ;;  %v1530_v14 = vld [vmem:[%s2482_s14] ss:$0 sm:$0xff] }
 0x308   :  { %v1602_v27 = vpop.f32.mrf.mxu1  ;;  %v921_v52 = vpack.c.bf16 %v920_v59, %v920_v59 }
 0x30a   :  { %1063 = vmatmul.mubr.bf16.vlgmr.msra.gmra.mxu0 %v921_v52 }
 0x30b   :  { %1562 = vmatpush3.bf16.msra.mxu0 %v1649_v60 }
 0x30c   :  { %1563 = vmatprep.subr.bf16.mxu0 %v1651_v39 }
 0x30f   :  { %1564 = vmatpush3.bf16.msra.mxu0 %v1653_v3 }
 0x310   :  { %1565 = vmatprep.subr.bf16.mxu0 %v1655_v19 }
 0x313   :  { %1566 = vmatpush3.bf16.msra.mxu0 %v1657_v53 }
 0x314   :  { %1567 = vmatprep.subr.bf16.mxu0 %v1659_v26 }
 0x317   :  { %1568 = vmatpush3.bf16.msra.mxu0 %v1661_v55 }
 0x318   :  { %1569 = vmatprep.subr.bf16.mxu0 %v1663_v48 }
 0x31b   :  { %1570 = vmatpush3.bf16.msra.mxu0 %v1665_v56 }
 0x31c   :  { %1571 = vmatprep.subr.bf16.mxu0 %v1667_v15 }
 0x31f   :  { %1572 = vmatpush3.bf16.msra.mxu0 %v1669_v7 }
 0x320   :  { %1573 = vmatprep.subr.bf16.mxu0 %v1671_v49 }
 0x323   :  { %1574 = vmatpush3.bf16.msra.mxu0 %v1673_v44 }
 0x324   :  { %1575 = vmatprep.subr.bf16.mxu0 %v1675_v18 }
 0x327   :  { %1576 = vmatpush3.bf16.msra.mxu0 %v1677_v51 }
 0x3ca   :  { %v1064_v30 = vpop.f32.mrf.mxu0 }
 0x3cb   :  { %v1065_v40 = vadd.f32 %v1064_v30, %v943_v10 }
 0x3cc   :  { %v1066_v47 = vpop.f32.mrf.mxu0 }
 0x3cd   :  { %vm1071_vm15 = vcmp.ge.f32.partialorder %v1065_v40, 0.0  ;;  %v1073_v2 = vmul.f32 0.01, %v1065_v40  ;;  %v1067_v38 = vadd.f32 %v1066_v47, %v947_v43 }
 0x3ce   :  { %v1068_v9 = vpop.f32.mrf.mxu0 }
 0x3cf   :  { %vm1072_vm0 = vcmp.ge.f32.partialorder %v1067_v38, 0.0  ;;  %v1074_v28 = vmul.f32 0.01, %v1067_v38  ;;  %v1075_v63 = vsel %vm1071_vm15, %v1065_v40, %v1073_v2 }
 0x3d0   :  { %v1069_v33 = vpop.f32.mrf.mxu0  ;;  %v1077_v21 = vpack.c.bf16 %v1075_v63, %v1075_v63 }
 0x3d1   :  { %v1076_v58 = vsel %vm1072_vm0, %v1067_v38, %v1074_v28 }
 0x3d2   :  { %v1078_v5 = vpack.c.bf16 %v1076_v58, %v1076_v58 }
 0x3d4   :  { %1246 = vmatprep.mubr.bf16.mxu1 %v1078_v5  ;;  %1428 = vmatprep.mubr.bf16.mxu0 %v1078_v5 }
 0x3d5   :  { %1247 = vmatmul.mubr.bf16.vlgmr.msra.gmra.mxu1 %v1077_v21  ;;  %1429 = vmatmul.mubr.bf16.vlgmr.msra.gmra.mxu0 %v1077_v21 }
 0x495   :  { %v1555_v62 = vpop.f32.mrf.mxu1  ;;  %v1577_v1 = vpop.f32.mrf.mxu0 }
 0x497   :  { %v1556_v8 = vpop.f32.mrf.mxu1  ;;  %v1578_v17 = vpop.f32.mrf.mxu0 }
 0x498   :  { %v1557_v12 = vadd.f32 %v1556_v8, %v1555_v62  ;;  %v1579_v0 = vadd.f32 %v1578_v17, %v1577_v1 }
 0x499   :  { %v1558_v41 = vpop.f32.mrf.mxu1  ;;  %v1580_v11 = vpop.f32.mrf.mxu0 }
 0x49a   :  { %v1249_v45 = vadd.f32 %v1557_v12, %v1493_v31  ;;  %v1431_v50 = vadd.f32 %v1579_v0, %v1511_v13 }
 0x49b   :  { %v1559_v4 = vpop.f32.mrf.mxu1  ;;  %v1581_v35 = vpop.f32.mrf.mxu0 }
 0x49c   :  { %v1510_v29 = vmul.f32 -1.442695, %v1249_v45  ;;  %v1528_v57 = vmul.f32 -1.442695, %v1431_v50 }
 0x49e   :  { %1678 = vpow2.f32 %v1510_v29 }
 0x49f   :  { %1680 = vpow2.f32 %v1528_v57 }
 0x4ab   :  { %v1679_v37 = vpop.eup %1678 }
 0x4ac   :  { %v1681_v34 = vpop.eup %1680  ;;  %v1257_v61 = vadd.f32 1.0, %v1679_v37 }
 0x4ad   :  { %v1439_v46 = vadd.f32 1.0, %v1681_v34 }
 0x4ae   :  { %1682 = vrcp.f32 %v1257_v61 }
 0x4af   :  { %1684 = vrcp.f32 %v1439_v46 }
 0x4bb   :  { %v1683_v23 = vpop.eup %1682 }
 0x4bc   :  { %v1685_v32 = vpop.eup %1684  ;;  %1260 = vst [vmem:[%s2481_s15] sm:$0xff] %v1683_v23 }
 0x4bd   :  { %v1449_v54 = vmul.f32 %v1685_v32, %v1529_v36 }
 0x4bf   :  { %v1457_v59 = vadd.f32 %v1530_v14, %v1449_v54 }
 0x4c1   :  { %1458 = vst [vmem:[%s2483_s16] sm:$0xff] %v1457_v59 }

</bundles_post_ra>
